<compile_context>
chip_gen: v7x
topology: tpu7x:2x2x1
jax: 0.10.0
libtpu: 0.0.40
codegen_flags: <defaults>
</compile_context>

<pallas_src>
import functools

import jax
import jax.numpy as jnp
from jax.experimental import pallas as pl
from jax.experimental.pallas import tpu as pltpu

NN = 4  # module-level constant in model2.py (edge-branch channel count)


# ----------------------------------------------------------------------------
# Fused FeatLayer kernel (one grid step per batch element)
# ----------------------------------------------------------------------------
def featlayer_kernel(xcol_ref, fe_ref, wmask_ref,
                     w1t_ref, b1_ref, wex_ref, wef_ref, be_ref,
                     w2t_ref, b2_ref, wo_side_ref, wo_y_ref, bo_ref,
                     cat_ref, es_ref, x1z_ref, col_ref, *, H, W, K, F):
    # xcol_ref : (1, K*K*Cin, HW)  im2col'd input, channels-first, lane-dense
    # fe_ref   : (1, 1, HW)        edge feature (f32)
    # wmask_ref: (K, HW)           width-boundary masks for the kw taps (f32)
    # w1t_ref  : (C, K*K*Cin)      conv1 weights (row = out channel)
    # wex_ref  : (NN, C), wef_ref: (NN, 1)   conv_e split weights
    # w2t_ref  : (C-NN, K*K*C)     conv2_1 weights
    # wo_*_ref : merged o1_e/o1_s weights split over [side | y1] channels
    # cat_ref  : (1, C, HW)        output = cat([side_e, y1]) channels-first
    # es_ref   : (1, 2, HW)        output rows: [e_1, s_1]
    # x1z_ref  : VMEM (C, F+HW+F) f32   zero-flanked copy of conv1 output
    # col_ref  : VMEM (K*K*C, HW)       im2col matrix for conv2_1 (MXU dtype)
    HW = H * W
    p = K // 2
    C = w1t_ref.shape[0]
    mxu_dt = w1t_ref.dtype

    # ---- conv1 + ReLU: one deep matmul (contraction = K*K*Cin) -------------
    x1 = jnp.dot(w1t_ref[...], xcol_ref[0],
                 preferred_element_type=jnp.float32)             # (C, HW)
    x1 = jnp.maximum(x1 + b1_ref[...], 0.0)

    # ---- conv_e: 1x1 over cat([x1, f_e]) == split matmul + rank-1 term -----
    x1m = x1.astype(mxu_dt)
    side = jnp.dot(wex_ref[...], x1m, preferred_element_type=jnp.float32)
    side = jnp.maximum(side + wef_ref[...] * fe_ref[0] + be_ref[...], 0.0)

    # ---- conv2_1 + ReLU: in-kernel im2col (contraction = K*K*C) ------------
    # Spatial shifts of x1 are static lane slices of a zero-flanked copy;
    # height overflow lands in the zero flanks, width overflow is masked with
    # a precomputed per-kw lane mask.  Flanks are re-zeroed every grid step so
    # correctness does not depend on which TensorCore ran program_id 0
    # (megacore-safe); the center region overwrites them anyway.
    zflank = jnp.zeros((C, F), jnp.float32)
    x1z_ref[:, :F] = zflank
    x1z_ref[:, F + HW:] = zflank
    x1z_ref[:, F:F + HW] = x1

    # hoist the per-kw mask rows (loaded once, reused across kh)
    wrows = [wmask_ref[kw:kw + 1, :] for kw in range(K)]

    for kh in range(K):
        for kw in range(K):
            t = kh * K + kw
            if kh == p and kw == p:
                col_ref[t * C:(t + 1) * C, :] = x1m        # center tap: reuse
                continue
            d = (kh - p) * W + (kw - p)
            tap = x1z_ref[:, F + d:F + HW + d]             # (C, HW)
            if kw != p:
                tap = tap * wrows[kw]
            col_ref[t * C:(t + 1) * C, :] = tap.astype(col_ref.dtype)

    y1 = jnp.dot(w2t_ref[...], col_ref[...],
                 preferred_element_type=jnp.float32)             # (C-NN, HW)
    y1 = jnp.maximum(y1 + b2_ref[...], 0.0)
    # TODO(synk): nn.Dropout() is a train-time random mask; forward here uses
    # inference semantics (identity).

    # ---- outputs: cat written as channel slabs, o1_e / o1_s merged ---------
    cat_ref[0, :NN, :] = side
    cat_ref[0, NN:, :] = y1
    es_ref[0] = (jnp.dot(wo_side_ref[...], side.astype(mxu_dt),
                         preferred_element_type=jnp.float32)
                 + jnp.dot(wo_y_ref[...], y1.astype(mxu_dt),
                           preferred_element_type=jnp.float32)
                 + bo_ref[...])


# ----------------------------------------------------------------------------
# Wrapper: NCHW in / NCHW out, one pallas_call, no post-kernel transposes
# ----------------------------------------------------------------------------
def feat_layer_forward(x, f_e, params, *, k, mxu_dtype=jnp.bfloat16):
    # x  : (B, in_channel, H, W)  NCHW ; f_e : (B, 1, H, W) NCHW
    B, Cin, H, W = x.shape
    C = params['w1'].shape[-1]
    C2 = C - NN
    p = k // 2
    HW = H * W
    # flank only needs to cover the maximum tap shift; keep it 128-aligned so
    # the center-region store stays lane-aligned (unmasked vst).
    F = ((p * W + p + 127) // 128) * 128

    # wrapper-side im2col of the input: rows ordered (kh, kw, cin) to match
    # w1.reshape(K*K*Cin, C); lane axis is HW (dense), no NHWC transpose.
    xpc = jnp.pad(x, ((0, 0), (0, 0), (p, p), (p, p)))
    xcol = jnp.concatenate(
        [xpc[:, :, kh:kh + H, kw:kw + W].reshape(B, Cin, HW)
         for kh in range(k) for kw in range(k)],
        axis=1).astype(mxu_dtype)                                # (B, KKCin, HW)

    fe = f_e.reshape(B, 1, HW).astype(jnp.float32)

    # width-boundary masks for the in-kernel im2col of conv2_1
    lane_w = jnp.arange(HW, dtype=jnp.int32) % W
    wmask = jnp.stack(
        [((lane_w + (kw - p) >= 0) & (lane_w + (kw - p) < W))
         for kw in range(k)]).astype(jnp.float32)                # (k, HW)

    # channels-first weight / bias forms (constant-folded under jit)
    w1t = params['w1'].reshape(k * k * Cin, C).T.astype(mxu_dtype)   # (C, KKCin)
    b1 = params['b1'].reshape(C, 1)
    wex = params['we'][:C, :].T.astype(mxu_dtype)                    # (NN, C)
    wef = params['we'][C:, :].T                                      # (NN, 1) f32
    be = params['be'].reshape(NN, 1)
    w2t = params['w2'].reshape(k * k * C, C2).T.astype(mxu_dtype)    # (C2, KKC)
    b2 = params['b2'].reshape(C2, 1)
    wo = jnp.concatenate([params['woe'], params['wos']], axis=1).T   # (2, C)
    wo_side = wo[:, :NN].astype(mxu_dtype)
    wo_y = wo[:, NN:].astype(mxu_dtype)
    bo = jnp.concatenate([params['boe'], params['bos']], axis=1).T   # (2, 1)

    kernel = functools.partial(featlayer_kernel, H=H, W=W, K=k, F=F)

    def full(a):
        n = a.ndim
        return pl.BlockSpec(a.shape, lambda b, _n=n: (0,) * _n)

    # Whole-image blocks are fine at these sizes; for large H, W the lever is
    # an extra H-tile grid axis with halo rows in the index_map.
    cat_cf, es = pl.pallas_call(
        kernel,
        out_shape=(jax.ShapeDtypeStruct((B, C, HW), jnp.float32),
                   jax.ShapeDtypeStruct((B, 2, HW), jnp.float32)),
        grid=(B,),
        in_specs=[
            pl.BlockSpec((1, k * k * Cin, HW), lambda b: (b, 0, 0)),
            pl.BlockSpec((1, 1, HW), lambda b: (b, 0, 0)),
            full(wmask), full(w1t), full(b1), full(wex), full(wef), full(be),
            full(w2t), full(b2), full(wo_side), full(wo_y), full(bo),
        ],
        out_specs=(
            pl.BlockSpec((1, C, HW), lambda b: (b, 0, 0)),
            pl.BlockSpec((1, 2, HW), lambda b: (b, 0, 0)),
        ),
        scratch_shapes=[
            pltpu.VMEM((C, F + HW + F), jnp.float32),  # zero-flanked conv1 out
            pltpu.VMEM((k * k * C, HW), mxu_dtype),    # conv2_1 im2col matrix
        ],
        compiler_params=pltpu.CompilerParams(
            dimension_semantics=("parallel",)),
    )(xcol, fe, wmask, w1t, b1, wex, wef, be, w2t, b2, wo_side, wo_y, bo)

    # (B, C, HW) is already NCHW flattened -> plain reshapes, no transposes.
    cat = cat_cf.reshape(B, C, H, W)
    e1 = es[:, 0:1, :].reshape(B, 1, H, W)
    s1 = es[:, 1:2, :].reshape(B, 1, H, W)
    return cat, e1, s1


# ----------------------------------------------------------------------------
# Deterministic parameter init (shapes from FeatLayer.__init__)
# ----------------------------------------------------------------------------
def init_params(key, in_channel, channel, k):
    c2 = channel - NN
    ks = jax.random.split(key, 5)

    def w_init(kk, shape):
        fan_in = 1
        for d in shape[:-1]:
            fan_in *= d
        return (jax.random.normal(kk, shape, jnp.float32)
                / jnp.sqrt(float(fan_in))).astype(jnp.float32)

    return dict(
        # conv1: Conv2d(in_channel, channel, k, 1, k//2)        -> HWIO
        w1=w_init(ks[0], (k, k, in_channel, channel)),
        b1=jnp.full((1, channel), 0.01, jnp.float32),
        # conv_e: Conv2d(1 + channel, NN, 1, 1); rows [0:C]=x, row C=f_e
        we=w_init(ks[1], (channel + 1, NN)),
        be=jnp.full((1, NN), 0.01, jnp.float32),
        # conv2_1: Conv2d(channel, channel - NN, k, 1, k//2)    -> HWIO
        w2=w_init(ks[2], (k, k, channel, c2)),
        b2=jnp.full((1, c2), 0.01, jnp.float32),
        # o1_e / o1_s: Conv2d(channel, 1, 1, 1)                 -> (Cin, 1)
        woe=w_init(ks[3], (channel, 1)),
        boe=jnp.zeros((1, 1), jnp.float32),
        wos=w_init(ks[4], (channel, 1)),
        bos=jnp.zeros((1, 1), jnp.float32),
    )


# ----------------------------------------------------------------------------
# Pure-JAX reference (for correctness check)
# ----------------------------------------------------------------------------
def feat_layer_reference(x, f_e, params, *, k):
    pad = k // 2

    def conv(inp, w, b, p):
        y = jax.lax.conv_general_dilated(
            inp, w, (1, 1), [(p, p), (p, p)],
            dimension_numbers=('NCHW', 'HWIO', 'NCHW'))
        return y + b.reshape(1, -1, 1, 1)

    x1 = jax.nn.relu(conv(x, params['w1'], params['b1'], pad))
    we4 = params['we'].reshape(1, 1, *params['we'].shape)
    side_e = jax.nn.relu(
        conv(jnp.concatenate([x1, f_e], axis=1), we4, params['be'], 0))
    y1 = jax.nn.relu(conv(x1, params['w2'], params['b2'], pad))
    cat = jnp.concatenate([side_e, y1], axis=1)
    woe4 = params['woe'].reshape(1, 1, *params['woe'].shape)
    wos4 = params['wos'].reshape(1, 1, *params['wos'].shape)
    e1 = conv(cat, woe4, params['boe'], 0)
    s1 = conv(cat, wos4, params['bos'], 0)
    return cat, e1, s1


if __name__ == "__main__":
    in_channel, channel, k = 4, 32, 3
    B, H, W = 2, 16, 16

    key = jax.random.PRNGKey(0)
    kx, kf, kp = jax.random.split(key, 3)
    x = jax.random.normal(kx, (B, in_channel, H, W), dtype=jnp.float32)
    f_e = jax.random.normal(kf, (B, 1, H, W), dtype=jnp.float32)
    params = init_params(kp, in_channel, channel, k)

    rcat, re1, rs1 = feat_layer_reference(x, f_e, params, k=k)

    # exact-math check (f32 MXU operands) against the pure-JAX reference
    fwd_f32 = jax.jit(functools.partial(feat_layer_forward, k=k,
                                        mxu_dtype=jnp.float32))
    outs32 = fwd_f32(x, f_e, params)
    jax.block_until_ready(outs32)
    for got, ref in zip(outs32, (rcat, re1, rs1)):
        assert got.shape == ref.shape, (got.shape, ref.shape)
        err = float(jnp.max(jnp.abs(got - ref)))
        assert err < 1e-3, f"f32 path max abs err {err}"

    # performance configuration: bf16 MXU operands, f32 accumulate/epilogue
    # (looser tolerance accounts for bf16 operand rounding in the matmuls).
    fwd_bf16 = jax.jit(functools.partial(feat_layer_forward, k=k,
                                         mxu_dtype=jnp.bfloat16))
    outs16 = fwd_bf16(x, f_e, params)
    jax.block_until_ready(outs16)
    for got, ref in zip(outs16, (rcat, re1, rs1)):
        assert got.shape == ref.shape, (got.shape, ref.shape)
        err = float(jnp.max(jnp.abs(got - ref)))
        assert err < 5e-2, f"bf16 path max abs err {err}"

    print("KERNEL_OK")
</pallas_src>

<mosaic_0001>
module attributes {stable_mosaic.version = 11 : i64} {
  func.func @featlayer_kernel(%arg0: i32, %arg1: memref<1x36x256xf32, #tpu.memory_space<vmem>>, %arg2: memref<1x1x256xf32, #tpu.memory_space<vmem>>, %arg3: memref<3x256xf32, #tpu.memory_space<vmem>>, %arg4: memref<32x36xf32, #tpu.memory_space<vmem>>, %arg5: memref<32x1xf32, #tpu.memory_space<vmem>>, %arg6: memref<4x32xf32, #tpu.memory_space<vmem>>, %arg7: memref<4x1xf32, #tpu.memory_space<vmem>>, %arg8: memref<4x1xf32, #tpu.memory_space<vmem>>, %arg9: memref<28x288xf32, #tpu.memory_space<vmem>>, %arg10: memref<28x1xf32, #tpu.memory_space<vmem>>, %arg11: memref<2x4xf32, #tpu.memory_space<vmem>>, %arg12: memref<2x28xf32, #tpu.memory_space<vmem>>, %arg13: memref<2x1xf32, #tpu.memory_space<vmem>>, %arg14: memref<1x32x256xf32, #tpu.memory_space<vmem>>, %arg15: memref<1x2x256xf32, #tpu.memory_space<vmem>>, %arg16: memref<32x512xf32, #tpu.memory_space<vmem>>, %arg17: memref<288x256xf32, #tpu.memory_space<vmem>>) attributes {dimension_semantics = [#tpu.dimension_semantics<parallel>], iteration_bounds = array<i64: 2>, scalar_prefetch = 0 : i64, scratch_operands = 2 : i64, tpu.core_type = #tpu.core_type<tc>, window_params = [{transform_indices = @transform_0, window_bounds = array<i64: 1, 36, 256>}, {transform_indices = @transform_1, window_bounds = array<i64: 1, 1, 256>}, {pipeline_mode = #tpu.pipeline_mode<synchronous>, transform_indices = @transform_2, window_bounds = array<i64: 3, 256>}, {pipeline_mode = #tpu.pipeline_mode<synchronous>, transform_indices = @transform_3, window_bounds = array<i64: 32, 36>}, {pipeline_mode = #tpu.pipeline_mode<synchronous>, transform_indices = @transform_4, window_bounds = array<i64: 32, 1>}, {pipeline_mode = #tpu.pipeline_mode<synchronous>, transform_indices = @transform_5, window_bounds = array<i64: 4, 32>}, {pipeline_mode = #tpu.pipeline_mode<synchronous>, transform_indices = @transform_6, window_bounds = array<i64: 4, 1>}, {pipeline_mode = #tpu.pipeline_mode<synchronous>, transform_indices = @transform_7, window_bounds = array<i64: 4, 1>}, {pipeline_mode = #tpu.pipeline_mode<synchronous>, transform_indices = @transform_8, window_bounds = array<i64: 28, 288>}, {pipeline_mode = #tpu.pipeline_mode<synchronous>, transform_indices = @transform_9, window_bounds = array<i64: 28, 1>}, {pipeline_mode = #tpu.pipeline_mode<synchronous>, transform_indices = @transform_10, window_bounds = array<i64: 2, 4>}, {pipeline_mode = #tpu.pipeline_mode<synchronous>, transform_indices = @transform_11, window_bounds = array<i64: 2, 28>}, {pipeline_mode = #tpu.pipeline_mode<synchronous>, transform_indices = @transform_12, window_bounds = array<i64: 2, 1>}, {transform_indices = @transform_13, window_bounds = array<i64: 1, 32, 256>}, {transform_indices = @transform_14, window_bounds = array<i64: 1, 2, 256>}]} {
    %c0 = arith.constant 0 : index
    %c0_0 = arith.constant 0 : index
    %0 = vector.load %arg4[%c0, %c0_0] : memref<32x36xf32, #tpu.memory_space<vmem>>, vector<32x36xf32>
    %c0_1 = arith.constant 0 : index
    %c0_2 = arith.constant 0 : index
    %c0_3 = arith.constant 0 : index
    %1 = vector.load %arg1[%c0_1, %c0_2, %c0_3] : memref<1x36x256xf32, #tpu.memory_space<vmem>>, vector<1x36x256xf32>
    %2 = vector.shape_cast %1 : vector<1x36x256xf32> to vector<36x256xf32>
    %cst = arith.constant dense<0.000000e+00> : vector<32x256xf32>
    %3 = tpu.matmul %0, %2, %cst {dimension_numbers = #tpu.dot_dimension_numbers<[1], [0], [0], [1], [0, 0, 1, 1], [], []>} : vector<32x36xf32>, vector<36x256xf32>, vector<32x256xf32> -> vector<32x256xf32>
    %c0_4 = arith.constant 0 : index
    %c0_5 = arith.constant 0 : index
    %4 = vector.load %arg5[%c0_4, %c0_5] : memref<32x1xf32, #tpu.memory_space<vmem>>, vector<32x1xf32>
    %5 = vector.broadcast %4 : vector<32x1xf32> to vector<32x256xf32>
    %6 = arith.addf %3, %5 : vector<32x256xf32>
    %cst_6 = arith.constant 0.000000e+00 : f32
    %7 = vector.broadcast %cst_6 : f32 to vector<32x256xf32>
    %8 = arith.maximumf %6, %7 : vector<32x256xf32>
    %c0_7 = arith.constant 0 : index
    %c0_8 = arith.constant 0 : index
    %9 = vector.load %arg6[%c0_7, %c0_8] : memref<4x32xf32, #tpu.memory_space<vmem>>, vector<4x32xf32>
    %cst_9 = arith.constant dense<0.000000e+00> : vector<4x256xf32>
    %10 = tpu.matmul %9, %8, %cst_9 {dimension_numbers = #tpu.dot_dimension_numbers<[1], [0], [0], [1], [0, 0, 1, 1], [], []>} : vector<4x32xf32>, vector<32x256xf32>, vector<4x256xf32> -> vector<4x256xf32>
    %c0_10 = arith.constant 0 : index
    %c0_11 = arith.constant 0 : index
    %11 = vector.load %arg7[%c0_10, %c0_11] : memref<4x1xf32, #tpu.memory_space<vmem>>, vector<4x1xf32>
    %c0_12 = arith.constant 0 : index
    %c0_13 = arith.constant 0 : index
    %c0_14 = arith.constant 0 : index
    %12 = vector.load %arg2[%c0_12, %c0_13, %c0_14] : memref<1x1x256xf32, #tpu.memory_space<vmem>>, vector<1x1x256xf32>
    %13 = vector.shape_cast %12 : vector<1x1x256xf32> to vector<1x256xf32>
    %14 = vector.broadcast %11 : vector<4x1xf32> to vector<4x256xf32>
    %15 = vector.broadcast %13 : vector<1x256xf32> to vector<4x256xf32>
    %16 = arith.mulf %14, %15 : vector<4x256xf32>
    %17 = arith.addf %10, %16 : vector<4x256xf32>
    %c0_15 = arith.constant 0 : index
    %c0_16 = arith.constant 0 : index
    %18 = vector.load %arg8[%c0_15, %c0_16] : memref<4x1xf32, #tpu.memory_space<vmem>>, vector<4x1xf32>
    %19 = vector.broadcast %18 : vector<4x1xf32> to vector<4x256xf32>
    %20 = arith.addf %17, %19 : vector<4x256xf32>
    %cst_17 = arith.constant 0.000000e+00 : f32
    %21 = vector.broadcast %cst_17 : f32 to vector<4x256xf32>
    %22 = arith.maximumf %20, %21 : vector<4x256xf32>
    %cst_18 = arith.constant 0.000000e+00 : f32
    %23 = vector.broadcast %cst_18 : f32 to vector<32x128xf32>
    %c0_19 = arith.constant 0 : index
    %c0_20 = arith.constant 0 : index
    %24 = vector.load %arg16[%c0_19, %c0_20] : memref<32x512xf32, #tpu.memory_space<vmem>>, vector<32x128xf32>
    tpu.vector_store %arg16[%c0_19, %c0_20], %23 {strides = array<i32>} : memref<32x512xf32, #tpu.memory_space<vmem>>, vector<32x128xf32>,
    %c0_21 = arith.constant 0 : index
    %c384 = arith.constant 384 : index
    %25 = vector.load %arg16[%c0_21, %c384] : memref<32x512xf32, #tpu.memory_space<vmem>>, vector<32x128xf32>
    tpu.vector_store %arg16[%c0_21, %c384], %23 {strides = array<i32>} : memref<32x512xf32, #tpu.memory_space<vmem>>, vector<32x128xf32>,
    %c0_22 = arith.constant 0 : index
    %c128 = arith.constant 128 : index
    %26 = vector.load %arg16[%c0_22, %c128] : memref<32x512xf32, #tpu.memory_space<vmem>>, vector<32x256xf32>
    tpu.vector_store %arg16[%c0_22, %c128], %8 {strides = array<i32>} : memref<32x512xf32, #tpu.memory_space<vmem>>, vector<32x256xf32>,
    %c0_23 = arith.constant 0 : index
    %c0_24 = arith.constant 0 : index
    %27 = vector.load %arg3[%c0_23, %c0_24] : memref<3x256xf32, #tpu.memory_space<vmem>>, vector<1x256xf32>
    %c2 = arith.constant 2 : index
    %c0_25 = arith.constant 0 : index
    %28 = vector.load %arg3[%c2, %c0_25] : memref<3x256xf32, #tpu.memory_space<vmem>>, vector<1x256xf32>
    %c0_26 = arith.constant 0 : index
    %c111 = arith.constant 111 : index
    %29 = vector.load %arg16[%c0_26, %c111] : memref<32x512xf32, #tpu.memory_space<vmem>>, vector<32x256xf32>
    %30 = vector.broadcast %27 : vector<1x256xf32> to vector<32x256xf32>
    %31 = arith.mulf %29, %30 : vector<32x256xf32>
    %c0_27 = arith.constant 0 : index
    %c0_28 = arith.constant 0 : index
    %32 = vector.load %arg17[%c0_27, %c0_28] : memref<288x256xf32, #tpu.memory_space<vmem>>, vector<32x256xf32>
    tpu.vector_store %arg17[%c0_27, %c0_28], %31 {strides = array<i32>} : memref<288x256xf32, #tpu.memory_space<vmem>>, vector<32x256xf32>,
    %c0_29 = arith.constant 0 : index
    %c112 = arith.constant 112 : index
    %33 = vector.load %arg16[%c0_29, %c112] : memref<32x512xf32, #tpu.memory_space<vmem>>, vector<32x256xf32>
    %c32 = arith.constant 32 : index
    %c0_30 = arith.constant 0 : index
    %34 = vector.load %arg17[%c32, %c0_30] : memref<288x256xf32, #tpu.memory_space<vmem>>, vector<32x256xf32>
    tpu.vector_store %arg17[%c32, %c0_30], %33 {strides = array<i32>} : memref<288x256xf32, #tpu.memory_space<vmem>>, vector<32x256xf32>,
    %c0_31 = arith.constant 0 : index
    %c113 = arith.constant 113 : index
    %35 = vector.load %arg16[%c0_31, %c113] : memref<32x512xf32, #tpu.memory_space<vmem>>, vector<32x256xf32>
    %36 = vector.broadcast %28 : vector<1x256xf32> to vector<32x256xf32>
    %37 = arith.mulf %35, %36 : vector<32x256xf32>
    %c64 = arith.constant 64 : index
    %c0_32 = arith.constant 0 : index
    %38 = vector.load %arg17[%c64, %c0_32] : memref<288x256xf32, #tpu.memory_space<vmem>>, vector<32x256xf32>
    tpu.vector_store %arg17[%c64, %c0_32], %37 {strides = array<i32>} : memref<288x256xf32, #tpu.memory_space<vmem>>, vector<32x256xf32>,
    %c0_33 = arith.constant 0 : index
    %c127 = arith.constant 127 : index
    %39 = vector.load %arg16[%c0_33, %c127] : memref<32x512xf32, #tpu.memory_space<vmem>>, vector<32x256xf32>
    %40 = vector.broadcast %27 : vector<1x256xf32> to vector<32x256xf32>
    %41 = arith.mulf %39, %40 : vector<32x256xf32>
    %c96 = arith.constant 96 : index
    %c0_34 = arith.constant 0 : index
    %42 = vector.load %arg17[%c96, %c0_34] : memref<288x256xf32, #tpu.memory_space<vmem>>, vector<32x256xf32>
    tpu.vector_store %arg17[%c96, %c0_34], %41 {strides = array<i32>} : memref<288x256xf32, #tpu.memory_space<vmem>>, vector<32x256xf32>,
    %c128_35 = arith.constant 128 : index
    %c0_36 = arith.constant 0 : index
    %43 = vector.load %arg17[%c128_35, %c0_36] : memref<288x256xf32, #tpu.memory_space<vmem>>, vector<32x256xf32>
    tpu.vector_store %arg17[%c128_35, %c0_36], %8 {strides = array<i32>} : memref<288x256xf32, #tpu.memory_space<vmem>>, vector<32x256xf32>,
    %c0_37 = arith.constant 0 : index
    %c129 = arith.constant 129 : index
    %44 = vector.load %arg16[%c0_37, %c129] : memref<32x512xf32, #tpu.memory_space<vmem>>, vector<32x256xf32>
    %45 = vector.broadcast %28 : vector<1x256xf32> to vector<32x256xf32>
    %46 = arith.mulf %44, %45 : vector<32x256xf32>
    %c160 = arith.constant 160 : index
    %c0_38 = arith.constant 0 : index
    %47 = vector.load %arg17[%c160, %c0_38] : memref<288x256xf32, #tpu.memory_space<vmem>>, vector<32x256xf32>
    tpu.vector_store %arg17[%c160, %c0_38], %46 {strides = array<i32>} : memref<288x256xf32, #tpu.memory_space<vmem>>, vector<32x256xf32>,
    %c0_39 = arith.constant 0 : index
    %c143 = arith.constant 143 : index
    %48 = vector.load %arg16[%c0_39, %c143] : memref<32x512xf32, #tpu.memory_space<vmem>>, vector<32x256xf32>
    %49 = vector.broadcast %27 : vector<1x256xf32> to vector<32x256xf32>
    %50 = arith.mulf %48, %49 : vector<32x256xf32>
    %c192 = arith.constant 192 : index
    %c0_40 = arith.constant 0 : index
    %51 = vector.load %arg17[%c192, %c0_40] : memref<288x256xf32, #tpu.memory_space<vmem>>, vector<32x256xf32>
    tpu.vector_store %arg17[%c192, %c0_40], %50 {strides = array<i32>} : memref<288x256xf32, #tpu.memory_space<vmem>>, vector<32x256xf32>,
    %c0_41 = arith.constant 0 : index
    %c144 = arith.constant 144 : index
    %52 = vector.load %arg16[%c0_41, %c144] : memref<32x512xf32, #tpu.memory_space<vmem>>, vector<32x256xf32>
    %c224 = arith.constant 224 : index
    %c0_42 = arith.constant 0 : index
    %53 = vector.load %arg17[%c224, %c0_42] : memref<288x256xf32, #tpu.memory_space<vmem>>, vector<32x256xf32>
    tpu.vector_store %arg17[%c224, %c0_42], %52 {strides = array<i32>} : memref<288x256xf32, #tpu.memory_space<vmem>>, vector<32x256xf32>,
    %c0_43 = arith.constant 0 : index
    %c145 = arith.constant 145 : index
    %54 = vector.load %arg16[%c0_43, %c145] : memref<32x512xf32, #tpu.memory_space<vmem>>, vector<32x256xf32>
    %55 = vector.broadcast %28 : vector<1x256xf32> to vector<32x256xf32>
    %56 = arith.mulf %54, %55 : vector<32x256xf32>
    %c256 = arith.constant 256 : index
    %c0_44 = arith.constant 0 : index
    %57 = vector.load %arg17[%c256, %c0_44] : memref<288x256xf32, #tpu.memory_space<vmem>>, vector<32x256xf32>
    tpu.vector_store %arg17[%c256, %c0_44], %56 {strides = array<i32>} : memref<288x256xf32, #tpu.memory_space<vmem>>, vector<32x256xf32>,
    %c0_45 = arith.constant 0 : index
    %c0_46 = arith.constant 0 : index
    %58 = vector.load %arg9[%c0_45, %c0_46] : memref<28x288xf32, #tpu.memory_space<vmem>>, vector<28x288xf32>
    %c0_47 = arith.constant 0 : index
    %c0_48 = arith.constant 0 : index
    %59 = vector.load %arg17[%c0_47, %c0_48] : memref<288x256xf32, #tpu.memory_space<vmem>>, vector<288x256xf32>
    %cst_49 = arith.constant dense<0.000000e+00> : vector<28x256xf32>
    %60 = tpu.matmul %58, %59, %cst_49 {dimension_numbers = #tpu.dot_dimension_numbers<[1], [0], [0], [1], [0, 0, 1, 1], [], []>} : vector<28x288xf32>, vector<288x256xf32>, vector<28x256xf32> -> vector<28x256xf32>
    %c0_50 = arith.constant 0 : index
    %c0_51 = arith.constant 0 : index
    %61 = vector.load %arg10[%c0_50, %c0_51] : memref<28x1xf32, #tpu.memory_space<vmem>>, vector<28x1xf32>
    %62 = vector.broadcast %61 : vector<28x1xf32> to vector<28x256xf32>
    %63 = arith.addf %60, %62 : vector<28x256xf32>
    %cst_52 = arith.constant 0.000000e+00 : f32
    %64 = vector.broadcast %cst_52 : f32 to vector<28x256xf32>
    %65 = arith.maximumf %63, %64 : vector<28x256xf32>
    %c0_53 = arith.constant 0 : index
    %c0_54 = arith.constant 0 : index
    %c0_55 = arith.constant 0 : index
    %66 = vector.load %arg14[%c0_53, %c0_54, %c0_55] : memref<1x32x256xf32, #tpu.memory_space<vmem>>, vector<1x4x256xf32>
    %67 = vector.shape_cast %66 : vector<1x4x256xf32> to vector<4x256xf32>
    %68 = vector.shape_cast %22 : vector<4x256xf32> to vector<1x4x256xf32>
    tpu.vector_store %arg14[%c0_53, %c0_54, %c0_55], %68 {strides = array<i32>} : memref<1x32x256xf32, #tpu.memory_space<vmem>>, vector<1x4x256xf32>,
    %c0_56 = arith.constant 0 : index
    %c4 = arith.constant 4 : index
    %c0_57 = arith.constant 0 : index
    %69 = vector.load %arg14[%c0_56, %c4, %c0_57] : memref<1x32x256xf32, #tpu.memory_space<vmem>>, vector<1x28x256xf32>
    %70 = vector.shape_cast %69 : vector<1x28x256xf32> to vector<28x256xf32>
    %71 = vector.shape_cast %65 : vector<28x256xf32> to vector<1x28x256xf32>
    tpu.vector_store %arg14[%c0_56, %c4, %c0_57], %71 {strides = array<i32>} : memref<1x32x256xf32, #tpu.memory_space<vmem>>, vector<1x28x256xf32>,
    %c0_58 = arith.constant 0 : index
    %c0_59 = arith.constant 0 : index
    %72 = vector.load %arg11[%c0_58, %c0_59] : memref<2x4xf32, #tpu.memory_space<vmem>>, vector<2x4xf32>
    %cst_60 = arith.constant dense<0.000000e+00> : vector<2x256xf32>
    %73 = tpu.matmul %72, %22, %cst_60 {dimension_numbers = #tpu.dot_dimension_numbers<[1], [0], [0], [1], [0, 0, 1, 1], [], []>} : vector<2x4xf32>, vector<4x256xf32>, vector<2x256xf32> -> vector<2x256xf32>
    %c0_61 = arith.constant 0 : index
    %c0_62 = arith.constant 0 : index
    %74 = vector.load %arg12[%c0_61, %c0_62] : memref<2x28xf32, #tpu.memory_space<vmem>>, vector<2x28xf32>
    %cst_63 = arith.constant dense<0.000000e+00> : vector<2x256xf32>
    %75 = tpu.matmul %74, %65, %cst_63 {dimension_numbers = #tpu.dot_dimension_numbers<[1], [0], [0], [1], [0, 0, 1, 1], [], []>} : vector<2x28xf32>, vector<28x256xf32>, vector<2x256xf32> -> vector<2x256xf32>
    %76 = arith.addf %73, %75 : vector<2x256xf32>
    %c0_64 = arith.constant 0 : index
    %c0_65 = arith.constant 0 : index
    %77 = vector.load %arg13[%c0_64, %c0_65] : memref<2x1xf32, #tpu.memory_space<vmem>>, vector<2x1xf32>
    %78 = vector.broadcast %77 : vector<2x1xf32> to vector<2x256xf32>
    %79 = arith.addf %76, %78 : vector<2x256xf32>
    %c0_66 = arith.constant 0 : index
    %c0_67 = arith.constant 0 : index
    %c0_68 = arith.constant 0 : index
    %80 = vector.load %arg15[%c0_66, %c0_67, %c0_68] : memref<1x2x256xf32, #tpu.memory_space<vmem>>, vector<1x2x256xf32>
    %81 = vector.shape_cast %80 : vector<1x2x256xf32> to vector<2x256xf32>
    %82 = vector.shape_cast %79 : vector<2x256xf32> to vector<1x2x256xf32>
    tpu.vector_store %arg15[%c0_66, %c0_67, %c0_68], %82 {strides = array<i32>} : memref<1x2x256xf32, #tpu.memory_space<vmem>>, vector<1x2x256xf32>,
    return
  }
  func.func @transform_0(%arg0: i32) -> (i32, i32, i32) {
    %c0_i32 = arith.constant 0 : i32
    %c0_i32_0 = arith.constant 0 : i32
    %c0_i32_1 = arith.constant 0 : i32
    return %arg0, %c0_i32, %c0_i32_0 : i32, i32, i32
  }
  func.func @transform_1(%arg0: i32) -> (i32, i32, i32) {
    %c0_i32 = arith.constant 0 : i32
    %c0_i32_0 = arith.constant 0 : i32
    %c0_i32_1 = arith.constant 0 : i32
    return %arg0, %c0_i32, %c0_i32_0 : i32, i32, i32
  }
  func.func @transform_2(%arg0: i32) -> (i32, i32) {
    %c0_i32 = arith.constant 0 : i32
    %c0_i32_0 = arith.constant 0 : i32
    %c0_i32_1 = arith.constant 0 : i32
    return %c0_i32, %c0_i32_0 : i32, i32
  }
  func.func @transform_3(%arg0: i32) -> (i32, i32) {
    %c0_i32 = arith.constant 0 : i32
    %c0_i32_0 = arith.constant 0 : i32
    %c0_i32_1 = arith.constant 0 : i32
    return %c0_i32, %c0_i32_0 : i32, i32
  }
  func.func @transform_4(%arg0: i32) -> (i32, i32) {
    %c0_i32 = arith.constant 0 : i32
    %c0_i32_0 = arith.constant 0 : i32
    %c0_i32_1 = arith.constant 0 : i32
    return %c0_i32, %c0_i32_0 : i32, i32
  }
  func.func @transform_5(%arg0: i32) -> (i32, i32) {
    %c0_i32 = arith.constant 0 : i32
    %c0_i32_0 = arith.constant 0 : i32
    %c0_i32_1 = arith.constant 0 : i32
    return %c0_i32, %c0_i32_0 : i32, i32
  }
  func.func @transform_6(%arg0: i32) -> (i32, i32) {
    %c0_i32 = arith.constant 0 : i32
    %c0_i32_0 = arith.constant 0 : i32
    %c0_i32_1 = arith.constant 0 : i32
    return %c0_i32, %c0_i32_0 : i32, i32
  }
  func.func @transform_7(%arg0: i32) -> (i32, i32) {
    %c0_i32 = arith.constant 0 : i32
    %c0_i32_0 = arith.constant 0 : i32
    %c0_i32_1 = arith.constant 0 : i32
    return %c0_i32, %c0_i32_0 : i32, i32
  }
  func.func @transform_8(%arg0: i32) -> (i32, i32) {
    %c0_i32 = arith.constant 0 : i32
    %c0_i32_0 = arith.constant 0 : i32
    %c0_i32_1 = arith.constant 0 : i32
    return %c0_i32, %c0_i32_0 : i32, i32
  }
  func.func @transform_9(%arg0: i32) -> (i32, i32) {
    %c0_i32 = arith.constant 0 : i32
    %c0_i32_0 = arith.constant 0 : i32
    %c0_i32_1 = arith.constant 0 : i32
    return %c0_i32, %c0_i32_0 : i32, i32
  }
  func.func @transform_10(%arg0: i32) -> (i32, i32) {
    %c0_i32 = arith.constant 0 : i32
    %c0_i32_0 = arith.constant 0 : i32
    %c0_i32_1 = arith.constant 0 : i32
    return %c0_i32, %c0_i32_0 : i32, i32
  }
  func.func @transform_11(%arg0: i32) -> (i32, i32) {
    %c0_i32 = arith.constant 0 : i32
    %c0_i32_0 = arith.constant 0 : i32
    %c0_i32_1 = arith.constant 0 : i32
    return %c0_i32, %c0_i32_0 : i32, i32
  }
  func.func @transform_12(%arg0: i32) -> (i32, i32) {
    %c0_i32 = arith.constant 0 : i32
    %c0_i32_0 = arith.constant 0 : i32
    %c0_i32_1 = arith.constant 0 : i32
    return %c0_i32, %c0_i32_0 : i32, i32
  }
  func.func @transform_13(%arg0: i32) -> (i32, i32, i32) {
    %c0_i32 = arith.constant 0 : i32
    %c0_i32_0 = arith.constant 0 : i32
    %c0_i32_1 = arith.constant 0 : i32
    return %arg0, %c0_i32, %c0_i32_0 : i32, i32, i32
  }
  func.func @transform_14(%arg0: i32) -> (i32, i32, i32) {
    %c0_i32 = arith.constant 0 : i32
    %c0_i32_0 = arith.constant 0 : i32
    %c0_i32_1 = arith.constant 0 : i32
    return %arg0, %c0_i32, %c0_i32_0 : i32, i32, i32
  }
}

</mosaic_0001>

<bundles_post_ra>
// kernel: feat_layer_forward.1
= control target key start
LH: loop header
LB: loop body
LE: loop exit
PB: predicated region body
PF: predicated region fallthrough
CT: control target
= control target key end

     0   :  { %s2642_s29 = smov 0   ;;  %s3274_s0 = inlined_call_operand.vmem [shape: f32[2,36,256], index: 0, kind: input, shape index: {}]   ;;  %s3275_s1 = inlined_call_operand.vmem [shape: f32[2,1,256], index: 1, kind: input, shape index: {}]   ;;  %s3276_s2 = inlined_call_operand.vmem [shape: f32[3,256], index: 2, kind: input, shape index: {}]   ;;  %s3277_s3 = inlined_call_operand.vmem [shape: f32[32,36], index: 3, kind: input, shape index: {}]   ;;  %s3278_s4 = inlined_call_operand.vmem [shape: f32[32,1], index: 4, kind: input, shape index: {}]   ;;  %s3279_s5 = inlined_call_operand.vmem [shape: f32[4,32], index: 5, kind: input, shape index: {}]   ;;  %s3280_s6 = inlined_call_operand.vmem [shape: f32[4,1], index: 6, kind: input, shape index: {}]   ;;  %s3281_s7 = inlined_call_operand.vmem [shape: f32[4,1], index: 7, kind: input, shape index: {}]   ;;  %s3282_s8 = inlined_call_operand.vmem [shape: f32[28,288], index: 8, kind: input, shape index: {}]   ;;  %s3283_s9 = inlined_call_operand.vmem [shape: f32[28,1], index: 9, kind: input, shape index: {}]   ;;  %s3284_s10 = inlined_call_operand.vmem [shape: f32[2,4], index: 10, kind: input, shape index: {}]   ;;  %s3285_s11 = inlined_call_operand.vmem [shape: f32[2,28], index: 11, kind: input, shape index: {}]   ;;  %s3286_s12 = inlined_call_operand.vmem [shape: f32[2,1], index: 12, kind: input, shape index: {}]   ;;  %s3287_s13 = inlined_call_operand.vmem [shape: f32[2,32,256], index: 13, kind: output, shape index: {0}]   ;;  %s3288_s14 = inlined_call_operand.vmem [shape: f32[2,2,256], index: 14, kind: output, shape index: {1}]  }
   0x1 LB: > { %s2136_s30 = sadd.s32 4294967295, %s2554_s29   ;;  %p2140_p0 = scmp.ge.s32.totalorder %s2554_s29, 1  ;;  %s2554_s29 = sphi %s2642_s29, %s25_s29  }
   0x2   : > { %p424_p1 = scmp.lt.s32.totalorder %s2554_s29, 3 }
   0x4   : > { %p425_p2 = pnand %p2140_p0, %p424_p1 }
   0x5   : > { %p479_p3 = scmp.lt.s32.totalorder (!%p425_p2), %s2136_s30, 1  ;;  %v662_v0 = vlaneseq (!%p425_p2)  ;;  %v2556_v1 = vmov (!%p425_p2), 0.0   ;;  %v514_v2 = vld [vmem:[%s3278_s4 + $0x10] sm:$0xff] (!%p425_p2)  ;;  %v2557_v3 = vmov (!%p425_p2), 0   ;;  %v512_v4 = vld [vmem:[%s3278_s4] sm:$0xff] (!%p425_p2)  ;;  %v515_v6 = vld [vmem:[%s3278_s4 + $0x18] sm:$0xff] (!%p425_p2) }
   0x6   : > { %428 = sbr.rel (%p425_p2) target bundleno = 917 (0x395), region = 72  ;;  %620 = vmatprep.mubr.f32.mxu0 (!%p425_p2), %v2556_v1  ;;  %2307 = vset.pattern.permute.xlu1 (!%p425_p2), %v2557_v3  ;;  %v513_v7 = vld [vmem:[%s3278_s4 + $0x8] sm:$0xff] (!%p425_p2)  ;;  %v775_v9 = vld [vmem:[%s3276_s2] ss:$4 sm:$0x3] (!%p425_p2)  ;;  %s2558_s17 = smov (!%p425_p2), 111  }
   0x7   : > { %2306 = vset.pattern.permute.xlu0 (!%p425_p2), %v2557_v3  ;;  %v663_v5 = vshrl.u32 (!%p425_p2), %v662_v0, 7  ;;  %528 = vperm.xlu1 (!%p425_p2), %2307, %v514_v2   ;;  %v2154_v11 = vld [vmem:[%s3276_s2 + $0x2] ss:$4 sm:$0x3] (!%p425_p2)  ;;  %vm549_vm0 = vcmask (!%p425_p2), 1043456   ;;  %s2559_s18 = smov (!%p425_p2), 113  }
   0x8   : > { %518 = vperm.xlu0 (!%p425_p2), %2306, %v512_v4   ;;  %v498_v30 = vld [vmem:[%s3277_s3] sm:$0xff] (!%p425_p2)  ;;  %vm536_vm1 = vcmask (!%p425_p2), 293888   ;;  %s2560_s21 = smov (!%p425_p2), 127   ;;  %v499_v31 = vld [vmem:[%s3277_s3 + $0x8] sm:$0xff] (!%p425_p2)  ;;  %s2561_s24 = smov (!%p425_p2), 1   ;;  %v500_v32 = vld [vmem:[%s3277_s3 + $0x10] sm:$0xff] (!%p425_p2) }
   0x9   : > { %v2666_v8 = vsub.s32 (!%p425_p2), 1, %v663_v5  ;;  %v2671_v10 = vsub.s32 (!%p425_p2), 0, %v663_v5  ;;  %s2562_s27 = smov (!%p425_p2), 15   ;;  %v501_v33 = vld [vmem:[%s3277_s3 + $0x18] sm:$0xff] (!%p425_p2)  ;;  %s2563_s16 = smov (!%p425_p2), 17   ;;  %vm979_vm2 = vcmask (!%p425_p2), 924672  }
   0xa   : > { %s2564_s19 = smov (!%p425_p2), 16   ;;  %vm803_vm3 = vcmask (!%p425_p2), 908288   ;;  %vm1073_vm4 = vcmask (!%p425_p2), 1039360   ;;  %vm674_vm5 = vcmask (!%p425_p2), 261120   ;;  %vm1126_vm6 = vcmask (!%p425_p2), 7168  }
   0xb   : > { %533 = vperm.xlu1 (!%p425_p2), %2307, %v515_v6   ;;  %v798_v15 = vrot.slane (!%p425_p2), %v775_v9, %v2666_v8  ;;  %v794_v20 = vrot.slane (!%p425_p2), %v775_v9, %v2671_v10  ;;  %v974_v26 = vrot.slane (!%p425_p2), %v2154_v11, %v2666_v8  ;;  %v970_v27 = vrot.slane (!%p425_p2), %v2154_v11, %v2671_v10 }
   0xc   : > { %523 = vperm.xlu0 (!%p425_p2), %2306, %v513_v7   ;;  %vm1032_vm7 = vcmask (!%p425_p2), 121856   ;;  %vm856_vm8 = vcmask (!%p425_p2), 138240   ;;  %vm929_vm9 = vcmask (!%p425_p2), 130048   ;;  %vm1391_vm10 = vcmask (!%p425_p2), 916480  }
   0xd   : > { %s3290_s30 = smov (!%p479_p3, %s2136_s30), 1  ;;  %vm2566_vm11 = vmmov 1   ;;  %vm1856_vm13 = vcmask 228352   ;;  %vm1935_vm14 = vcmask 31744  }
   0xe   : > { %s2286_s23 = smul.u32 80, %s3290_s30  ;;  %vm2263_vm12 = vmpackc.low %vm549_vm0, %vm2566_vm11 }
   0xf   : > { %801 = vrot.lane.b32.xlu1 %v798_v15, %s2558_s17 }
  0x10   : > { %s2676_s28 = scalar_lea.vmem %s3274_s0, %s2286_s23  ;;  %799 = vrot.lane.b32.xlu0 %v794_v20, %s2558_s17  ;;  %s2565_s23 = smov 112  }
  0x11   : > { %v503_v12 = vld [vmem:[%s2676_s28 + $0x8] sm:$0xff]  ;;  %v505_v13 = vld [vmem:[%s2676_s28 + $0x18] sm:$0xff]  ;;  %v502_v14 = vld [vmem:[%s2676_s28] sm:$0xff] }
  0x12   : > { %v2170_v16 = vpack.c.bf16 %v505_v13, %v503_v12  ;;  %v504_v17 = vld [vmem:[%s2676_s28 + $0x10] sm:$0xff]  ;;  %v507_v18 = vld [vmem:[%s2676_s28 + $0x28] sm:$0xff]  ;;  %v509_v19 = vld [vmem:[%s2676_s28 + $0x38] sm:$0xff] }
  0x13   : > { %v2172_v21 = vpack.c.bf16 %v504_v17, %v502_v14  ;;  %v2174_v22 = vpack.c.bf16 %v509_v19, %v507_v18  ;;  %v506_v23 = vld [vmem:[%s2676_s28 + $0x20] sm:$0xff]  ;;  %v508_v24 = vld [vmem:[%s2676_s28 + $0x30] sm:$0xff]  ;;  %v511_v28 = vld [vmem:[%s2676_s28 + $0x48] sm:$0xf]  ;;  %977 = vrot.lane.b32.xlu1 %v974_v26, %s2559_s18 }
  0x14   : > { %2171 = vmatprep.subr.bf16.mxu0 %v2170_v16  ;;  %v2176_v25 = vpack.c.bf16 %v508_v24, %v506_v23  ;;  %v510_v29 = vld [vmem:[%s2676_s28 + $0x40] sm:$0xf]  ;;  %975 = vrot.lane.b32.xlu0 %v970_v27, %s2559_s18 }
  0x15   : > { %2173 = vmatpush1.bf16.msra.mxu0 %v2172_v21 }
  0x16   : > { %2175 = vmatprep.subr.bf16.mxu0 %v2174_v22 }
  0x17   : > { %1071 = vrot.lane.b32.xlu1 %v798_v15, %s2560_s21 }
  0x18   : > { %1069 = vrot.lane.b32.xlu0 %v794_v20, %s2560_s21 }
  0x19   : > { %2177 = vmatpush1.bf16.msra.mxu0 %v2176_v25 }
  0x1a   : > { %2147 = vmatprep.subr.msk.mxu0 %vm549_vm0, %v511_v28 }
  0x1b   : > { %1173 = vrot.lane.b32.xlu1 %v974_v26, %s2561_s24 }
  0x1c   : > { %1171 = vrot.lane.b32.xlu0 %v970_v27, %s2561_s24 }
  0x1d   : > { %2148 = vmatpush1.msk.msra.mxu0 %vm549_vm0, %v510_v29 }
  0x1e   : > { %2149 = vmatmul.mubr.msk.f32.vlgmr.msra.gmra.mrb[0].mxu0 %vm536_vm1, %v498_v30 }
  0x1f   : > { %626 = vmatprep.mubr.f32.mxu0 %v2556_v1  ;;  %1265 = vrot.lane.b32.xlu1 %v798_v15, %s2562_s27 }
  0x20   : > { %1263 = vrot.lane.b32.xlu0 %v794_v20, %s2562_s27 }
  0x22   : > { %2150 = vmatmul.mubr.msk.f32.gmra.mrb[2].mxu0 %vm536_vm1, %v499_v31 }
  0x23   : > { %632 = vmatprep.mubr.f32.mxu0 %v2556_v1  ;;  %1430 = vrot.lane.b32.xlu1 %v974_v26, %s2563_s16 }
  0x24   : > { %1428 = vrot.lane.b32.xlu0 %v970_v27, %s2563_s16 }
  0x26   : > { %2151 = vmatmul.mubr.msk.f32.gmra.mrb[4].mxu0 %vm536_vm1, %v500_v32 }
  0x27   : > { %638 = vmatprep.mubr.f32.mxu0 %v2556_v1  ;;  %2314 = vrot.lane.b32.xlu1 %v2556_v1, %s2564_s19 }
  0x28   : > { %2309 = vrot.lane.b32.xlu0 %v2556_v1, %s2564_s19 }
  0x2a   : > { %2152 = vmatmul.mubr.msk.f32.gmra.mrb[6].mxu0 %vm536_vm1, %v501_v33 }
  0x2b   : > { %742 = vmatprep.mubr.f32.mxu0 %v2556_v1 }
  0x86   : > { %v529_v42 = vpop.permute.xlu1 %528 }
  0x87   : > { %v519_v34 = vpop.permute.xlu0 %518 }
  0x8a   : > { %v534_v43 = vpop.permute.xlu1 %533 }
  0x8b   : > { %v524_v35 = vpop.permute.xlu0 %523 }
  0x8e   : > { %v2737_v44 = vpop.permute.xlu1 %801 }
  0x8f   : > { %v800_v36 = vpop.permute.xlu0 %799 }
  0x90   : > { %v808_v37 = vmul.f32 0.0, %v800_v36  ;;  %v804_v54 = vsel %vm803_vm3, %v800_v36, %v2737_v44 }
  0x92   : > { %v2323_v38 = vpack.i.bf16 %v808_v37, %v808_v37  ;;  %v2739_v45 = vpop.permute.xlu1 %977 }
  0x93   : > { %v976_v39 = vpop.permute.xlu0 %975 }
  0x94   : > { %v984_v40 = vmul.f32 0.0, %v976_v39  ;;  %2319 = vrot.lane.b32.xlu0 %v2323_v38, %s2563_s16  ;;  %2324 = vrot.lane.b32.xlu1 %v2323_v38, %s2563_s16  ;;  %v2743_v49 = vsel %vm979_vm2, %v976_v39, %v2739_v45 }
  0x96   : > { %v2333_v41 = vpack.i.bf16 %v984_v40, %v984_v40  ;;  %v2745_v51 = vpop.permute.xlu1 %1071 }
  0x97   : > { %v2747_v52 = vpop.permute.xlu0 %1069 }
  0x98   : > { %2329 = vrot.lane.b32.xlu0 %v2333_v41, %s2562_s27  ;;  %2334 = vrot.lane.b32.xlu1 %v2333_v41, %s2562_s27  ;;  %v2756_v55 = vsel %vm1073_vm4, %v2747_v52, %v2745_v51 }
  0x9b   : > { %v2795_v21 = vpop.permute.xlu0 %1171 }
  0xf1   : > { %v622_v46 = vpop.f32.mrb[0].mxu0 }
  0xf2   : > { %v623_v47 = vadd.f32 %v622_v46, %v519_v34  ;;  %v624_v48 = vpop.f32.mrb[1].mxu0 }
  0xf3   : > { %v625_v50 = vadd.f32 %v624_v48, %v519_v34 }
  0xf4   : > { %v2749_v53 = vmax.f32 %v623_v47, 0.0 }
  0xf5   : > { %v2758_v56 = vmax.f32 %v625_v50, 0.0  ;;  %v628_v57 = vpop.f32.mrb[2].mxu0 }
  0xf6   : > { %v629_v58 = vadd.f32 %v628_v57, %v524_v35  ;;  %v630_v59 = vpop.f32.mrb[3].mxu0  ;;  %v809_v60 = vmul.f32 %v804_v54, %v2749_v53  ;;  %v985_v61 = vmul.f32 %v2743_v49, %v2749_v53  ;;  %v2773_v4 = vmul.f32 %v2756_v55, %v2749_v53 }
  0xf7   : > { %v631_v62 = vadd.f32 %v630_v59, %v524_v35  ;;  %v2338_v63 = vpack.i.bf16 %v2758_v56, %v2749_v53  ;;  %v810_v0 = vmul.f32 %v2737_v44, %v2758_v56  ;;  %v986_v2 = vmul.f32 %v2739_v45, %v2758_v56 }
  0xf8   : > { %v2769_v3 = vmax.f32 %v629_v58, 0.0  ;;  %v1080_v5 = vmul.f32 %v2745_v51, %v2758_v56  ;;  %v2812_v30 = vmul.f32 %v2795_v21, %v2749_v53 }
  0xf9   : > { %v2777_v6 = vmax.f32 %v631_v62, 0.0  ;;  %v634_v7 = vpop.f32.mrb[4].mxu0  ;;  %2339 = vrot.lane.b32.xlu0 %v2338_v63, %s2564_s19  ;;  %v2343_v9 = vpack.i.bf16 %v810_v0, %v809_v60  ;;  %v2348_v11 = vpack.i.bf16 %v986_v2, %v985_v61  ;;  %v1264_v63 = vpop.permute.xlu0 %1263 }
  0xfa   : > { %v635_v12 = vadd.f32 %v634_v7, %v529_v42  ;;  %v636_v13 = vpop.f32.mrb[5].mxu0  ;;  %v2782_v14 = vpack.c.bf16 %v2769_v3, %v2749_v53  ;;  %v812_v15 = vmul.f32 %v804_v54, %v2769_v3  ;;  %v988_v16 = vmul.f32 %v2743_v49, %v2769_v3 }
  0xfb   : > { %v637_v17 = vadd.f32 %v636_v13, %v529_v42  ;;  %v2358_v18 = vpack.i.bf16 %v2777_v6, %v2769_v3  ;;  %v2791_v19 = vpack.c.bf16 %v2777_v6, %v2758_v56  ;;  %v813_v20 = vmul.f32 %v2737_v44, %v2777_v6 }
  0xfc   : > { %v2797_v22 = vmax.f32 %v635_v12, 0.0  ;;  %v989_v23 = vmul.f32 %v2739_v45, %v2777_v6  ;;  %v2353_v24 = vpack.i.bf16 %v1080_v5, %v2773_v4  ;;  %v1082_v25 = vmul.f32 %v2756_v55, %v2769_v3 }
  0xfd   : > { %v2804_v26 = vmax.f32 %v637_v17, 0.0  ;;  %v640_v27 = vpop.f32.mrb[6].mxu0  ;;  %2359 = vrot.lane.b32.xlu1 %v2358_v18, %s2564_s19  ;;  %2179 = vmatprep.subr.bf16.mxu0 %v2791_v19  ;;  %v2363_v28 = vpack.i.bf16 %v813_v20, %v812_v15  ;;  %v1083_v29 = vmul.f32 %v2745_v51, %v2777_v6  ;;  %v2850_v48 = vmul.f32 %v2795_v21, %v2769_v3 }
  0xfe   : > { %v641_v31 = vadd.f32 %v640_v27, %v534_v43  ;;  %2344 = vrot.lane.b32.xlu0 %v2343_v9, %s2563_s16  ;;  %v642_v32 = vpop.f32.mrb[7].mxu0  ;;  %2181 = vmatpush1.bf16.msra.mxu0 %v2782_v14  ;;  %v2368_v33 = vpack.i.bf16 %v989_v23, %v988_v16  ;;  %v2817_v34 = vmul.f32 %v804_v54, %v2797_v22  ;;  %v1078_v20 = vmul.f32 0.0, %v2747_v52  ;;  %v1174_v23 = vpop.permute.xlu1 %1173 }
  0xff   : > { %v643_v35 = vadd.f32 %v642_v32, %v534_v43  ;;  %v2373_v36 = vpack.i.bf16 %v1083_v29, %v1082_v25  ;;  %v2378_v37 = vpack.i.bf16 %v2804_v26, %v2797_v22  ;;  %v2823_v38 = vmul.f32 %v2737_v44, %v2804_v26 }
 0x100   : > { %v2825_v39 = vmax.f32 %v641_v31, 0.0  ;;  %v2829_v40 = vmul.f32 %v2743_v49, %v2797_v22  ;;  %v2833_v41 = vmul.f32 %v2739_v45, %v2804_v26  ;;  %v2837_v42 = vmul.f32 %v2756_v55, %v2797_v22 }
 0x101   : > { %v2839_v43 = vmax.f32 %v643_v35, 0.0  ;;  %2364 = vrot.lane.b32.xlu1 %v2363_v28, %s2563_s16  ;;  %v2383_v46 = vpack.i.bf16 %v2823_v38, %v2817_v34  ;;  %v2846_v47 = vmul.f32 %v2745_v51, %v2804_v26  ;;  %v2428_v0 = vpack.i.bf16 %v2850_v48, %v2812_v30 }
 0x102   : > { %2349 = vrot.lane.b32.xlu0 %v2348_v11, %s2562_s27  ;;  %v2855_v50 = vpack.c.bf16 %v2825_v39, %v2797_v22  ;;  %v818_v57 = vmul.f32 %v804_v54, %v2825_v39  ;;  %v2388_v58 = vpack.i.bf16 %v2833_v41, %v2829_v40  ;;  %v2862_v59 = vmul.f32 %v2743_v49, %v2825_v39  ;;  %v1266_v34 = vpop.permute.xlu1 %1265 }
 0x103   : > { %v2866_v60 = vpack.c.bf16 %v2839_v43, %v2804_v26  ;;  %v2393_v61 = vpack.i.bf16 %v2839_v43, %v2825_v39  ;;  %v819_v62 = vmul.f32 %v2737_v44, %v2839_v43  ;;  %v2408_v54 = vpack.i.bf16 %v2846_v47, %v2837_v42  ;;  %v653_v44 = vld [vmem:[%s3279_s5] sm:$0xf] }
 0x104   : > { %v995_v49 = vmul.f32 %v2739_v45, %v2839_v43  ;;  %v1088_v4 = vmul.f32 %v2756_v55, %v2825_v39  ;;  %v1089_v45 = vmul.f32 %v2745_v51, %v2839_v43  ;;  %v1185_v7 = vmul.f32 %v2795_v21, %v2797_v22  ;;  %v1429_v51 = vpop.permute.xlu0 %1428 }
 0x105   : > { %2369 = vrot.lane.b32.xlu1 %v2368_v33, %s2562_s27  ;;  %2183 = vmatprep.subr.bf16.mxu0 %v2866_v60  ;;  %v2398_v2 = vpack.i.bf16 %v819_v62, %v818_v57  ;;  %v1188_v55 = vmul.f32 %v2795_v21, %v2825_v39  ;;  %v1271_v11 = vmul.f32 %v1264_v63, %v2749_v53  ;;  %v1181_v31 = vmul.f32 0.0, %v1174_v23 }
 0x106   : > { %2354 = vrot.lane.b32.xlu0 %v2353_v24, %s2561_s24  ;;  %2185 = vmatpush1.bf16.msra.mxu0 %v2855_v50  ;;  %v2443_v5 = vpack.i.bf16 %v995_v49, %v2862_v59  ;;  %v2458_v9 = vpack.i.bf16 %v1089_v45, %v1088_v4  ;;  %v1274_v12 = vmul.f32 %v1264_v63, %v2769_v3 }
 0x107   : > { %v2438_v13 = vpack.i.bf16 %v1188_v55, %v1185_v7  ;;  %v2488_v15 = vpack.i.bf16 %v2769_v3, %v2749_v53  ;;  %v1277_v17 = vmul.f32 %v1264_v63, %v2797_v22  ;;  %v1280_v18 = vmul.f32 %v1264_v63, %v2825_v39 }
 0x108   : > { %v2463_v16 = vpack.i.bf16 %v1274_v12, %v1271_v11  ;;  %v1175_v25 = vsel %vm1126_vm6, %v2795_v21, %v1174_v23  ;;  %v2909_v27 = vmul.f32 %v1429_v51, %v2749_v53  ;;  %v2912_v28 = vmul.f32 %v1429_v51, %v2769_v3 }
 0x109   : > { %2374 = vrot.lane.b32.xlu1 %v2373_v36, %s2561_s24  ;;  %2153 = vmatmul.mubr.msk.f32.vlgmr.msra.gmra.mrb[8].mxu0 %vm674_vm5, %v653_v44  ;;  %v2473_v24 = vpack.i.bf16 %v1280_v18, %v1277_v17  ;;  %v2528_v52 = vpack.i.bf16 %v2825_v39, %v2797_v22  ;;  %v2403_v29 = vpack.i.bf16 %v1078_v20, %v1078_v20  ;;  %v3010_v17 = vpop.permute.xlu0 %2309 }
 0x10a   : > { %2394 = vrot.lane.b32.xlu0 %v2393_v61, %s2564_s19  ;;  %1781 = vmatprep.mubr.f32.mxu0 %v2556_v1  ;;  %v2508_v30 = vpack.i.bf16 %v2912_v28, %v2909_v27  ;;  %v1180_v21 = vmul.f32 %v1175_v25, %v2758_v56  ;;  %v2921_v32 = vmul.f32 %v1429_v51, %v2797_v22  ;;  %v1431_v61 = vpop.permute.xlu1 %1430  ;;  %v1593_v22 = vld [vmem:[%s3283_s9 + $0x8] sm:$0xff] }
 0x10b   : > { %v2924_v53 = vmul.f32 %v1429_v51, %v2825_v39  ;;  %v1267_v35 = vsel %vm1032_vm7, %v1264_v63, %v1266_v34  ;;  %v1183_v36 = vmul.f32 %v1175_v25, %v2777_v6  ;;  %v1186_v41 = vmul.f32 %v1175_v25, %v2804_v26  ;;  %v1594_v39 = vld [vmem:[%s3283_s9 + $0x10] sm:$0xff] }
 0x10c   : > { %v2418_v33 = vpack.i.bf16 %v1181_v31, %v1180_v21  ;;  %v1272_v38 = vmul.f32 %v1267_v35, %v2758_v56  ;;  %v1275_v47 = vmul.f32 %v1267_v35, %v2777_v6  ;;  %v1278_v57 = vmul.f32 %v1267_v35, %v2804_v26 }
 0x10d   : > { %2379 = vrot.lane.b32.xlu1 %v2378_v37, %s2564_s19  ;;  %v2543_v3 = vpack.i.bf16 %v2924_v53, %v2921_v32  ;;  %v1273_v37 = vmul.f32 0.0, %v1266_v34  ;;  %v2423_v40 = vpack.i.bf16 %v1181_v31, %v1183_v36  ;;  %v1189_v62 = vmul.f32 %v1175_v25, %v2839_v43  ;;  %v2320_v20 = vpop.permute.xlu0 %2319 }
 0x10e   : > { %2399 = vrot.lane.b32.xlu0 %v2398_v2, %s2563_s16  ;;  %v1438_v49 = vmul.f32 0.0, %v1431_v61  ;;  %v2483_v2 = vpack.i.bf16 %v2556_v1, %v2777_v6  ;;  %v2518_v55 = vpack.i.bf16 %v2556_v1, %v2804_v26  ;;  %v3012_v18 = vpop.permute.xlu1 %2314  ;;  %v2322_v21 = vunpack.i.h.bf16 %v2320_v20 }
 0x10f   : > { %v2448_v42 = vpack.i.bf16 %v1273_v37, %v1272_v38  ;;  %v2453_v48 = vpack.i.bf16 %v1273_v37, %v1275_v47  ;;  %v2468_v59 = vpack.i.bf16 %v1273_v37, %v1278_v57  ;;  %v2498_v63 = vpack.i.bf16 %v1181_v31, %v1189_v62 }
 0x110   : > { %v2321_v32 = vunpack.i.l.bf16 %v2320_v20 }
 0x111   : > { %2384 = vrot.lane.b32.xlu1 %v2383_v46, %s2563_s16  ;;  %v2433_v46 = vpack.i.bf16 %v1181_v31, %v1186_v41  ;;  %s2142_s16 = sshll.u32 %s3290_s30, 1 }
 0x112   : > { %2404 = vrot.lane.b32.xlu0 %v2403_v29, %s2561_s24  ;;  %v2325_v23 = vpop.permute.xlu1 %2324  ;;  %s487_s22 = scalar_lea.vmem %s3275_s1, %s2142_s16  ;;  %s2169_s16 = sshll.u32 %s3290_s30, 2 }
 0x115   : > { %2389 = vrot.lane.b32.xlu1 %v2388_v58, %s2562_s27  ;;  %v2478_v58 = vpack.i.bf16 %v2556_v1, %v2758_v56 }
 0x116   : > { %2419 = vrot.lane.b32.xlu0 %v2418_v33, %s2560_s21  ;;  %v3016_v25 = vpop.permute.xlu1 %2334 }
 0x119   : > { %2409 = vrot.lane.b32.xlu1 %v2408_v54, %s2561_s24  ;;  %v1432_v54 = vsel %vm856_vm8, %v1429_v51, %v1431_v61  ;;  %v749_v51 = vld [vmem:[%s3281_s7] sm:$0xf] }
 0x11a   : > { %2429 = vrot.lane.b32.xlu0 %v2428_v0, %s2560_s21  ;;  %v1440_v0 = vmul.f32 %v1432_v54, %v2777_v6  ;;  %v1437_v4 = vmul.f32 %v1432_v54, %v2758_v56  ;;  %v2523_v56 = vpack.i.bf16 %v2556_v1, %v2839_v43  ;;  %v1443_v6 = vmul.f32 %v1432_v54, %v2804_v26  ;;  %v1592_v26 = vld [vmem:[%s3283_s9] sm:$0xff] }
 0x11b   : > { %v1446_v11 = vmul.f32 %v1432_v54, %v2839_v43  ;;  %v2327_v54 = vunpack.i.h.bf16 %v2325_v23 }
 0x11c   : > { %v2503_v44 = vpack.i.bf16 %v1438_v49, %v1440_v0  ;;  %v2493_v45 = vpack.i.bf16 %v1438_v49, %v1437_v4  ;;  %v2533_v12 = vpack.i.bf16 %v1438_v49, %v1443_v6 }
 0x11d   : > { %2414 = vrot.lane.b32.xlu1 %v2403_v29, %s2561_s24 }
 0x11e   : > { %2444 = vrot.lane.b32.xlu0 %v2443_v5, %s2562_s27  ;;  %v1281_v5 = vmul.f32 %v1267_v35, %v2839_v43  ;;  %v1595_v43 = vld [vmem:[%s3283_s9 + $0x18] sm:$0xf] }
 0x120   : > { %v2513_v7 = vpack.i.bf16 %v1273_v37, %v1281_v5 }
 0x121   : > { %2424 = vrot.lane.b32.xlu1 %v2423_v40, %s2560_s21 }
 0x122   : > { %2449 = vrot.lane.b32.xlu0 %v2448_v42, %s2559_s18 }
 0x125   : > { %2434 = vrot.lane.b32.xlu1 %v2433_v46, %s2560_s21 }
 0x126   : > { %2459 = vrot.lane.b32.xlu0 %v2458_v9, %s2561_s24  ;;  %v1509_v9 = vld [vmem:[%s3282_s8 + $0x8] sm:$0xff] }
 0x127   : > { %1692 = vmatprep.mubr.f32.mxu1 %v1509_v9 }
 0x129   : > { %2439 = vrot.lane.b32.xlu1 %v2438_v13, %s2560_s21  ;;  %v2538_v13 = vpack.i.bf16 %v1438_v49, %v1446_v11 }
 0x12a   : > { %2464 = vrot.lane.b32.xlu0 %v2463_v16, %s2559_s18  ;;  %v2016_v16 = vld [vmem:[%s3286_s12] sm:$0x3] }
 0x12d   : > { %2454 = vrot.lane.b32.xlu1 %v2453_v48, %s2559_s18 }
 0x12e   : > { %2479 = vrot.lane.b32.xlu0 %v2478_v58, %s2565_s23 }
 0x131   : > { %2469 = vrot.lane.b32.xlu1 %v2468_v59, %s2559_s18 }
 0x132   : > { %2489 = vrot.lane.b32.xlu0 %v2488_v15, %s2565_s23  ;;  %v654_v15 = vld [vmem:[%s3280_s6] sm:$0xf] }
 0x135   : > { %2474 = vrot.lane.b32.xlu1 %v2473_v24, %s2559_s18  ;;  %v3014_v24 = vpop.permute.xlu0 %2329 }
 0x136   : > { %2499 = vrot.lane.b32.xlu0 %v2498_v63, %s2560_s21  ;;  %v2326_v63 = vunpack.i.l.bf16 %v2325_v23  ;;  %s2168_s21 = sshll.u32 %s3290_s30, 6 }
 0x137   : > { %s3227_s25 = scalar_lea.vmem %s3287_s13, %s2168_s21 }
 0x139   : > { %2484 = vrot.lane.b32.xlu1 %v2483_v2, %s2565_s23 }
 0x13a   : > { %2504 = vrot.lane.b32.xlu0 %v2503_v44, %s2558_s17 }
 0x13d   : > { %2494 = vrot.lane.b32.xlu1 %v2493_v45, %s2558_s17 }
 0x13e   : > { %2514 = vrot.lane.b32.xlu0 %v2513_v7, %s2559_s18 }
 0x141   : > { %2509 = vrot.lane.b32.xlu1 %v2508_v30, %s2558_s17 }
 0x142   : > { %2519 = vrot.lane.b32.xlu0 %v2518_v55, %s2565_s23 }
 0x145   : > { %2524 = vrot.lane.b32.xlu1 %v2523_v56, %s2565_s23 }
 0x146   : > { %2529 = vrot.lane.b32.xlu0 %v2528_v52, %s2565_s23 }
 0x149   : > { %2534 = vrot.lane.b32.xlu1 %v2533_v12, %s2558_s17  ;;  %v2312_v12 = vunpack.i.h.bf16 %v3010_v17 }
 0x14a   : > { %2539 = vrot.lane.b32.xlu0 %v2538_v13, %s2558_s17 }
 0x14d   : > { %2544 = vrot.lane.b32.xlu1 %v2543_v3, %s2558_s17 }
 0x14e   : > { %1598 = vperm.xlu0 %2306, %v1592_v26  }
 0x151   : > { %1603 = vperm.xlu1 %2307, %v1593_v22  }
 0x152   : > { %1608 = vperm.xlu0 %2306, %v1594_v39  }
 0x155   : > { %1613 = vperm.xlu1 %2307, %v1595_v43  }
 0x156   : > { %658 = vperm.xlu0 %2306, %v654_v15  }
 0x159   : > { %752 = vperm.xlu1 %2307, %v749_v51  }
 0x15a   : > { %2019 = vperm.xlu0 %2306, %v2016_v16   ;;  %v2311_v16 = vunpack.i.l.bf16 %v3010_v17 }
 0x16b   : > { %v3018_v27 = vpop.permute.xlu0 %2339 }
 0x16c   : > { %v2342_v49 = vunpack.i.h.bf16 %v3018_v27  ;;  %v2341_v2 = vunpack.i.l.bf16 %v3018_v27 }
 0x16e   : > { %v931_v51 = vsel %vm929_vm9, %v2341_v2, %v2342_v49  ;;  %v930_v17 = vsel %vm929_vm9, %v2311_v16, %v2341_v2 }
 0x16f   : > { %v2360_v28 = vpop.permute.xlu1 %2359 }
 0x170   : > { %v2345_v52 = vpop.permute.xlu0 %2344  ;;  %v2362_v58 = vunpack.i.h.bf16 %v2360_v28  ;;  %v2361_v59 = vunpack.i.l.bf16 %v2360_v28 }
 0x171   : > { %v2347_v29 = vunpack.i.h.bf16 %v2345_v52  ;;  %v2346_v30 = vunpack.i.l.bf16 %v2345_v52 }
 0x172   : > { %v933_v55 = vsel %vm929_vm9, %v2361_v59, %v2362_v58  ;;  %v932_v23 = vsel %vm929_vm9, %v2312_v12, %v2361_v59 }
 0x173   : > { %v2365_v31 = vpop.permute.xlu1 %2364  ;;  %v858_v34 = vsel %vm856_vm8, %v2346_v30, %v2347_v29  ;;  %v857_v36 = vsel %vm856_vm8, %v2321_v32, %v2346_v30  ;;  %v2194_v20 = vpack.c.bf16 %v933_v55, %v931_v51  ;;  %v2316_v29 = vunpack.i.l.bf16 %v3012_v18 }
 0x174   : > { %v2367_v53 = vunpack.i.h.bf16 %v2365_v31  ;;  %v2366_v3 = vunpack.i.l.bf16 %v2365_v31  ;;  %v3020_v33 = vpop.permute.xlu0 %2349 }
 0x175   : > { %v2352_v30 = vunpack.i.h.bf16 %v3020_v33  ;;  %v2351_v31 = vunpack.i.l.bf16 %v3020_v33 }
 0x176   : > { %v860_v35 = vsel %vm856_vm8, %v2366_v3, %v2367_v53  ;;  %v859_v37 = vsel %vm856_vm8, %v2322_v21, %v2366_v3  ;;  %v2196_v53 = vpack.c.bf16 %v932_v23, %v930_v17 }
 0x177   : > { %v3026_v38 = vpop.permute.xlu1 %2369  ;;  %v2186_v40 = vpack.c.bf16 %v860_v35, %v858_v34  ;;  %v2188_v41 = vpack.c.bf16 %v859_v37, %v857_v36  ;;  %v2317_v34 = vunpack.i.h.bf16 %v3012_v18  ;;  %v2332_v37 = vunpack.i.h.bf16 %v3014_v24 }
 0x178   : > { %v3028_v42 = vpop.permute.xlu0 %2354  ;;  %v2372_v27 = vunpack.i.h.bf16 %v3026_v38  ;;  %v2371_v28 = vunpack.i.l.bf16 %v3026_v38  ;;  %v2331_v38 = vunpack.i.l.bf16 %v3014_v24 }
 0x179   : > { %2187 = vmatprep.subr.bf16.mxu1 %v2186_v40  ;;  %v2357_v49 = vunpack.i.h.bf16 %v3028_v42  ;;  %v2356_v2 = vunpack.i.l.bf16 %v3028_v42 }
 0x17a   : > { %2189 = vmatpush1.bf16.msra.mxu1 %v2188_v41  ;;  %v1036_v33 = vsel %vm1032_vm7, %v2371_v28, %v2372_v27  ;;  %v1035_v24 = vsel %vm1032_vm7, %v2332_v37, %v2371_v28 }
 0x17b   : > { %v3030_v46 = vpop.permute.xlu1 %2374 }
 0x17c   : > { %v2395_v47 = vpop.permute.xlu0 %2394  ;;  %v2377_v40 = vunpack.i.h.bf16 %v3030_v46  ;;  %v2376_v18 = vunpack.i.l.bf16 %v3030_v46  ;;  %v1033_v46 = vsel %vm1032_vm7, %v2331_v38, %v2351_v31 }
 0x17d   : > { %v2397_v39 = vunpack.i.h.bf16 %v2395_v47  ;;  %v2396_v43 = vunpack.i.l.bf16 %v2395_v47  ;;  %v2204_v55 = vpack.c.bf16 %v1035_v24, %v1033_v46 }
 0x17f   : > { %v2380_v48 = vpop.permute.xlu1 %2379  ;;  %v937_v3 = vsel %vm929_vm9, %v2396_v43, %v2397_v39  ;;  %v936_v47 = vsel %vm929_vm9, %v2317_v34, %v2396_v43 }
 0x180   : > { %v2400_v57 = vpop.permute.xlu0 %2399  ;;  %v2382_v45 = vunpack.i.h.bf16 %v2380_v48  ;;  %v2381_v7 = vunpack.i.l.bf16 %v2380_v48  ;;  %v1034_v48 = vsel %vm1032_vm7, %v2351_v31, %v2352_v30 }
 0x181   : > { %v2402_v61 = vunpack.i.h.bf16 %v2400_v57  ;;  %v2401_v62 = vunpack.i.l.bf16 %v2400_v57 }
 0x182   : > { %v935_v52 = vsel %vm929_vm9, %v2381_v7, %v2382_v45  ;;  %v934_v36 = vsel %vm929_vm9, %v2316_v29, %v2381_v7  ;;  %v2336_v45 = vunpack.i.l.bf16 %v3016_v25 }
 0x183   : > { %v2385_v0 = vpop.permute.xlu1 %2384  ;;  %v864_v6 = vsel %vm856_vm8, %v2401_v62, %v2402_v61  ;;  %v863_v11 = vsel %vm856_vm8, %v2327_v54, %v2401_v62  ;;  %v2198_v35 = vpack.c.bf16 %v937_v3, %v935_v52  ;;  %v2200_v61 = vpack.c.bf16 %v936_v47, %v934_v36 }
 0x184   : > { %v2387_v4 = vunpack.i.h.bf16 %v2385_v0  ;;  %v2386_v44 = vunpack.i.l.bf16 %v2385_v0  ;;  %v3034_v5 = vpop.permute.xlu0 %2404  ;;  %v2337_v0 = vunpack.i.h.bf16 %v3016_v25 }
 0x185   : > { %v2406_v42 = vunpack.i.l.bf16 %v3034_v5 }
 0x186   : > { %v862_v56 = vsel %vm856_vm8, %v2386_v44, %v2387_v4  ;;  %v861_v9 = vsel %vm856_vm8, %v2326_v63, %v2386_v44  ;;  %v2202_v63 = vpack.c.bf16 %v1036_v33, %v1034_v48 }
 0x187   : > { %v3042_v13 = vpop.permute.xlu1 %2389  ;;  %v2190_v26 = vpack.c.bf16 %v864_v6, %v862_v56  ;;  %v2192_v22 = vpack.c.bf16 %v863_v11, %v861_v9  ;;  %v1130_v6 = vsel %vm1126_vm6, %v2376_v18, %v2377_v40  ;;  %v2407_v9 = vunpack.i.h.bf16 %v3034_v5 }
 0x188   : > { %v3044_v15 = vpop.permute.xlu0 %2419  ;;  %v2392_v57 = vunpack.i.h.bf16 %v3042_v13  ;;  %v2391_v58 = vunpack.i.l.bf16 %v3042_v13  ;;  %v1127_v23 = vsel %vm1126_vm6, %v2406_v42, %v2356_v2 }
 0x189   : > { %2191 = vmatprep.subr.bf16.mxu1 %v2190_v26  ;;  %v1128_v26 = vsel %vm1126_vm6, %v2356_v2, %v2357_v49  ;;  %v1129_v27 = vsel %vm1126_vm6, %v2407_v9, %v2376_v18  ;;  %v2422_v40 = vunpack.i.h.bf16 %v3044_v15 }
 0x18a   : > { %2193 = vmatpush1.bf16.msra.mxu1 %v2192_v22  ;;  %v1038_v56 = vsel %vm1032_vm7, %v2391_v58, %v2392_v57  ;;  %v1037_v25 = vsel %vm1032_vm7, %v2336_v45, %v2391_v58  ;;  %v2210_v16 = vpack.c.bf16 %v1130_v6, %v1128_v26  ;;  %v2212_v17 = vpack.c.bf16 %v1129_v27, %v1127_v23 }
 0x18b   : > { %v3055_v21 = vpop.permute.xlu1 %2409  ;;  %2195 = vmatprep.subr.bf16.mxu1 %v2194_v20 }
 0x18c   : > { %v3058_v32 = vpop.permute.xlu0 %2429  ;;  %v2412_v22 = vunpack.i.h.bf16 %v3055_v21  ;;  %v2411_v39 = vunpack.i.l.bf16 %v3055_v21 }
 0x18d   : > { %v2432_v57 = vunpack.i.h.bf16 %v3058_v32  ;;  %v2431_v58 = vunpack.i.l.bf16 %v3058_v32 }
 0x18e   : > { %2197 = vmatpush1.bf16.msra.mxu1 %v2196_v53  ;;  %v1132_v21 = vsel %vm1126_vm6, %v2411_v39, %v2412_v22 }
 0x18f   : > { %v2415_v41 = vpop.permute.xlu1 %2414  ;;  %2199 = vmatprep.subr.bf16.mxu1 %v2198_v35 }
 0x190   : > { %v2445_v59 = vpop.permute.xlu0 %2444  ;;  %v2417_v28 = vunpack.i.h.bf16 %v2415_v41  ;;  %v2416_v52 = vunpack.i.l.bf16 %v2415_v41  ;;  %v2421_v41 = vunpack.i.l.bf16 %v3044_v15 }
 0x191   : > { %v2447_v62 = vunpack.i.h.bf16 %v2445_v59  ;;  %v2446_v54 = vunpack.i.l.bf16 %v2445_v59 }
 0x192   : > { %2201 = vmatpush1.bf16.msra.mxu1 %v2200_v61  ;;  %v1131_v35 = vsel %vm1126_vm6, %v2416_v52, %v2411_v39  ;;  %v1228_v15 = vsel %vm1073_vm4, %v2421_v41, %v2422_v40  ;;  %v1227_v45 = vsel %vm1073_vm4, %v2431_v58, %v2421_v41 }
 0x193   : > { %v3076_v4 = vpop.permute.xlu1 %2424  ;;  %2203 = vmatprep.subr.bf16.mxu1 %v2202_v63  ;;  %v1040_v44 = vsel %vm1032_vm7, %v2446_v54, %v2447_v62  ;;  %v1039_v12 = vsel %vm1032_vm7, %v2337_v0, %v2446_v54 }
 0x194   : > { %v3081_v7 = vpop.permute.xlu0 %2449  ;;  %v2206_v11 = vpack.c.bf16 %v1040_v44, %v1038_v56  ;;  %v2208_v51 = vpack.c.bf16 %v1039_v12, %v1037_v25  ;;  %v2427_v33 = vunpack.i.h.bf16 %v3076_v4  ;;  %v2426_v38 = vunpack.i.l.bf16 %v3076_v4 }
 0x195   : > { %v2452_v61 = vunpack.i.h.bf16 %v3081_v7 }
 0x196   : > { %2205 = vmatpush1.bf16.msra.mxu1 %v2204_v55  ;;  %v1230_v18 = vsel %vm1073_vm4, %v2426_v38, %v2427_v33  ;;  %v1229_v32 = vsel %vm1073_vm4, %v2432_v57, %v2426_v38 }
 0x197   : > { %v3088_v13 = vpop.permute.xlu1 %2434  ;;  %2207 = vmatprep.subr.bf16.mxu1 %v2206_v11  ;;  %v2226_v0 = vpack.c.bf16 %v1230_v18, %v1228_v15  ;;  %v2228_v56 = vpack.c.bf16 %v1229_v32, %v1227_v45 }
 0x198   : > { %v2460_v43 = vpop.permute.xlu0 %2459  ;;  %v2437_v62 = vunpack.i.h.bf16 %v3088_v13 }
 0x199   : > { %v2462_v20 = vunpack.i.h.bf16 %v2460_v43  ;;  %v2461_v5 = vunpack.i.l.bf16 %v2460_v43 }
 0x19a   : > { %2209 = vmatpush1.bf16.msra.mxu1 %v2208_v51 }
 0x19b   : > { %v2440_v29 = vpop.permute.xlu1 %2439  ;;  %2211 = vmatprep.subr.bf16.mxu1 %v2210_v16  ;;  %v1134_v30 = vsel %vm1126_vm6, %v2461_v5, %v2462_v20  ;;  %v1133_v3 = vsel %vm1126_vm6, %v2417_v28, %v2461_v5 }
 0x19c   : > { %v3097_v31 = vpop.permute.xlu0 %2464  ;;  %v2214_v53 = vpack.c.bf16 %v1134_v30, %v1132_v21  ;;  %v2216_v37 = vpack.c.bf16 %v1133_v3, %v1131_v35  ;;  %v2441_v49 = vunpack.i.l.bf16 %v2440_v29  ;;  %v2442_v4 = vunpack.i.h.bf16 %v2440_v29 }
 0x19d   : > { %v2466_v46 = vunpack.i.l.bf16 %v3097_v31  ;;  %v2467_v9 = vunpack.i.h.bf16 %v3097_v31 }
 0x19e   : > { %2213 = vmatpush1.bf16.msra.mxu1 %v2212_v17 }
 0x19f   : > { %v3101_v34 = vpop.permute.xlu1 %2454  ;;  %2215 = vmatprep.subr.bf16.mxu1 %v2214_v53 }
 0x1a0   : > { %v3104_v36 = vpop.permute.xlu0 %2479  ;;  %v2457_v2 = vunpack.i.h.bf16 %v3101_v34 }
 0x1a1   : > { %v2482_v22 = vunpack.i.h.bf16 %v3104_v36  ;;  %v2481_v39 = vunpack.i.l.bf16 %v3104_v36 }
 0x1a2   : > { %2217 = vmatpush1.bf16.msra.mxu1 %v2216_v37 }
 0x1a3   : > { %v3110_v47 = vpop.permute.xlu1 %2469  ;;  %2219 = vmatprep.subr.bf16.mxu1 %v2791_v19  ;;  %v2451_v19 = vunpack.i.l.bf16 %v3081_v7 }
 0x1a4   : > { %v3113_v48 = vpop.permute.xlu0 %2489  ;;  %v2472_v43 = vunpack.i.h.bf16 %v3110_v47  ;;  %v2471_v20 = vunpack.i.l.bf16 %v3110_v47 }
 0x1a5   : > { %v1319_v16 = vsel %vm979_vm2, %v2466_v46, %v2451_v19  ;;  %v2492_v57 = vunpack.i.h.bf16 %v3113_v48 }
 0x1a6   : > { %2221 = vmatpush1.bf16.msra.mxu1 %v2782_v14  ;;  %v2436_v14 = vunpack.i.l.bf16 %v3088_v13  ;;  %v1324_v18 = vsel %vm979_vm2, %v2471_v20, %v2472_v43 }
 0x1a7   : > { %v3119_v59 = vpop.permute.xlu1 %2474  ;;  %2223 = vmatprep.subr.bf16.mxu1 %v2866_v60  ;;  %v2456_v60 = vunpack.i.l.bf16 %v3101_v34 }
 0x1a8   : > { %v2500_v54 = vpop.permute.xlu0 %2499  ;;  %v1232_v6 = vsel %vm1073_vm4, %v2436_v14, %v2437_v62  ;;  %v1231_v25 = vsel %vm1073_vm4, %v2441_v49, %v2436_v14  ;;  %v2477_v34 = vunpack.i.h.bf16 %v3119_v59  ;;  %v2476_v35 = vunpack.i.l.bf16 %v3119_v59 }
 0x1a9   : > { %v2502_v63 = vunpack.i.h.bf16 %v2500_v54  ;;  %v2501_v24 = vunpack.i.l.bf16 %v2500_v54  ;;  %v1322_v26 = vsel %vm979_vm2, %v2456_v60, %v2457_v2  ;;  %v1321_v31 = vsel %vm979_vm2, %v2467_v9, %v2456_v60 }
 0x1aa   : > { %2225 = vmatpush1.bf16.msra.mxu1 %v2855_v50  ;;  %v1320_v50 = vsel %vm979_vm2, %v2451_v19, %v2452_v61  ;;  %v2236_v47 = vpack.c.bf16 %v1321_v31, %v1319_v16  ;;  %v2491_v59 = vunpack.i.l.bf16 %v3113_v48  ;;  %v1393_v48 = vsel %vm1391_vm10, %v2481_v39, %v2482_v22  ;;  %v1510_v31 = vld [vmem:[%s3282_s8 + $0x10] sm:$0xff] }
 0x1ab   : > { %v3132_v44 = vpop.permute.xlu1 %2484  ;;  %2227 = vmatprep.subr.bf16.mxu1 %v2226_v0  ;;  %v1234_v7 = vsel %vm1073_vm4, %v2501_v24, %v2502_v63  ;;  %v1233_v11 = vsel %vm1073_vm4, %v2442_v4, %v2501_v24  ;;  %v2234_v30 = vpack.c.bf16 %v1322_v26, %v1320_v50  ;;  %v1323_v0 = vsel %vm979_vm2, %v2476_v35, %v2471_v20 }
 0x1ac   : > { %v2505_v55 = vpop.permute.xlu0 %2504  ;;  %v2230_v42 = vpack.c.bf16 %v1234_v7, %v1232_v6  ;;  %v2232_v28 = vpack.c.bf16 %v1233_v11, %v1231_v25  ;;  %v2487_v17 = vunpack.i.h.bf16 %v3132_v44  ;;  %v2486_v21 = vunpack.i.l.bf16 %v3132_v44 }
 0x1ad   : > { %v2507_v12 = vunpack.i.h.bf16 %v2505_v55  ;;  %v2506_v13 = vunpack.i.l.bf16 %v2505_v55 }
 0x1ae   : > { %2229 = vmatpush1.bf16.msra.mxu1 %v2228_v56  ;;  %v1395_v62 = vsel %vm1391_vm10, %v2486_v21, %v2487_v17  ;;  %v1394_v45 = vsel %vm1391_vm10, %v2492_v57, %v2486_v21  ;;  %v1392_v56 = vsel %vm1391_vm10, %v2491_v59, %v2481_v39  ;;  %v1511_v17 = vld [vmem:[%s3282_s8 + $0x18] sm:$0xff] }
 0x1af   : > { %v2495_v51 = vpop.permute.xlu1 %2494  ;;  %2231 = vmatprep.subr.bf16.mxu1 %v2230_v42  ;;  %v1487_v3 = vsel %vm803_vm3, %v2506_v13, %v2507_v12  ;;  %v2242_v44 = vpack.c.bf16 %v1395_v62, %v1393_v48  ;;  %v2244_v50 = vpack.c.bf16 %v1394_v45, %v1392_v56  ;;  %v1515_v21 = vld [vmem:[%s3282_s8 + $0x38] sm:$0xff] }
 0x1b0   : > { %v2497_v5 = vunpack.i.h.bf16 %v2495_v51  ;;  %v2496_v23 = vunpack.i.l.bf16 %v2495_v51  ;;  %v2515_v27 = vpop.permute.xlu0 %2514 }
 0x1b1   : > { %v2517_v52 = vunpack.i.h.bf16 %v2515_v27  ;;  %v2516_v29 = vunpack.i.l.bf16 %v2515_v27 }
 0x1b2   : > { %2233 = vmatpush1.bf16.msra.mxu1 %v2232_v28  ;;  %v1485_v53 = vsel %vm803_vm3, %v2496_v23, %v2497_v5 }
 0x1b3   : > { %v2510_v36 = vpop.permute.xlu1 %2509  ;;  %2235 = vmatprep.subr.bf16.mxu1 %v2234_v30  ;;  %v2250_v37 = vpack.c.bf16 %v1487_v3, %v1485_v53  ;;  %v1326_v33 = vsel %vm979_vm2, %v2516_v29, %v2517_v52  ;;  %v1325_v15 = vsel %vm979_vm2, %v2477_v34, %v2516_v29  ;;  %v1508_v52 = vld [vmem:[%s3282_s8] sm:$0xff]  ;;  %v1513_v53 = vld [vmem:[%s3282_s8 + $0x28] sm:$0xff]  ;;  %v1514_v3 = vld [vmem:[%s3282_s8 + $0x30] sm:$0xff] }
 0x1b4   : > { %v2512_v38 = vunpack.i.h.bf16 %v2510_v36  ;;  %v2511_v40 = vunpack.i.l.bf16 %v2510_v36  ;;  %v2520_v41 = vpop.permute.xlu0 %2519  ;;  %v2238_v58 = vpack.c.bf16 %v1326_v33, %v1324_v18  ;;  %v2240_v60 = vpack.c.bf16 %v1325_v15, %v1323_v0  ;;  %v1512_v30 = vld [vmem:[%s3282_s8 + $0x20] sm:$0xff]  ;;  %v1518_v34 = vld [vmem:[%s3282_s8 + $0x50] sm:$0xf]  ;;  %v1519_v33 = vld [vmem:[%s3282_s8 + $0x58] sm:$0xf] }
 0x1b5   : > { %2251 = vmatprep.subr.bf16.mxu0 %v2250_v37  ;;  %v2522_v54 = vunpack.i.h.bf16 %v2520_v41  ;;  %v2521_v63 = vunpack.i.l.bf16 %v2520_v41  ;;  %v1516_v36 = vld [vmem:[%s3282_s8 + $0x40] sm:$0xff]  ;;  %v1517_v37 = vld [vmem:[%s3282_s8 + $0x48] sm:$0xf] }
 0x1b6   : > { %v1484_v61 = vsel %vm803_vm3, %v2511_v40, %v2496_v23  ;;  %v1486_v19 = vsel %vm803_vm3, %v2512_v38, %v2506_v13  ;;  %2237 = vmatpush1.bf16.msra.mxu1 %v2236_v47  ;;  %v655_v41 = vld [vmem:[%s487_s22] sm:$0x3]  ;;  %s497_s22 = scalar_lea.vmem %s3288_s14, %s2169_s16 }
 0x1b7   : > { %v2252_v14 = vpack.c.bf16 %v1486_v19, %v1484_v61  ;;  %v2525_v24 = vpop.permute.xlu1 %2524  ;;  %2239 = vmatprep.subr.bf16.mxu1 %v2238_v58  ;;  %v1397_v6 = vsel %vm1391_vm10, %v2521_v63, %v2522_v54  ;;  %v665_v47 = vrot.slane %v655_v41, %v2671_v10  ;;  %v669_v57 = vrot.slane %v655_v41, %v2666_v8 }
 0x1b8   : > { %v2527_v32 = vunpack.i.h.bf16 %v2525_v24  ;;  %v2526_v49 = vunpack.i.l.bf16 %v2525_v24  ;;  %v2530_v2 = vpop.permute.xlu0 %2529 }
 0x1b9   : > { %v2532_v4 = vunpack.i.h.bf16 %v2530_v2  ;;  %v2531_v46 = vunpack.i.l.bf16 %v2530_v2  ;;  %2253 = vmatpush1.bf16.msra.mxu0 %v2252_v14 }
 0x1ba   : > { %2241 = vmatpush1.bf16.msra.mxu1 %v2240_v60  ;;  %v1399_v7 = vsel %vm1391_vm10, %v2526_v49, %v2527_v32 }
 0x1bb   : > { %v2535_v55 = vpop.permute.xlu1 %2534  ;;  %2243 = vmatprep.subr.bf16.mxu1 %v2242_v44  ;;  %v2246_v12 = vpack.c.bf16 %v1399_v7, %v1397_v6  ;;  %v1396_v26 = vsel %vm1391_vm10, %v2531_v46, %v2521_v63  ;;  %v1398_v22 = vsel %vm1391_vm10, %v2532_v4, %v2526_v49 }
 0x1bc   : > { %v2537_v9 = vunpack.i.h.bf16 %v2535_v55  ;;  %v2536_v42 = vunpack.i.l.bf16 %v2535_v55  ;;  %v2540_v11 = vpop.permute.xlu0 %2539  ;;  %v2248_v23 = vpack.c.bf16 %v1398_v22, %v1396_v26 }
 0x1bd   : > { %v2542_v13 = vunpack.i.h.bf16 %v2540_v11  ;;  %v2541_v25 = vunpack.i.l.bf16 %v2540_v11 }
 0x1be   : > { %2245 = vmatpush1.bf16.msra.mxu1 %v2244_v50  ;;  %v1489_v43 = vsel %vm803_vm3, %v2536_v42, %v2537_v9 }
 0x1bf   : > { %v2545_v51 = vpop.permute.xlu1 %2544  ;;  %2247 = vmatprep.subr.bf16.mxu1 %v2246_v12  ;;  %v1491_v39 = vsel %vm803_vm3, %v2541_v25, %v2542_v13 }
 0x1c0   : > { %v2547_v16 = vunpack.i.h.bf16 %v2545_v51  ;;  %v2546_v20 = vunpack.i.l.bf16 %v2545_v51  ;;  %v2254_v5 = vpack.c.bf16 %v1491_v39, %v1489_v43 }
 0x1c2   : > { %v1488_v27 = vsel %vm803_vm3, %v2546_v20, %v2536_v42  ;;  %v1490_v28 = vsel %vm803_vm3, %v2547_v16, %v2541_v25  ;;  %2255 = vmatprep.subr.bf16.mxu0 %v2254_v5  ;;  %2249 = vmatpush1.bf16.msra.mxu1 %v2248_v23 }
 0x1c3   : > { %v2256_v29 = vpack.c.bf16 %v1490_v28, %v1488_v27 }
 0x1c5   : > { %1693 = vmatmul.mubr.f32.vlgmr.msra.gmra.mrb[0].mxu1 %v1508_v52  ;;  %2257 = vmatpush1.bf16.msra.mxu0 %v2256_v29 }
 0x1c6   : > { %1698 = vmatprep.mubr.f32.mxu1 %v1512_v30 }
 0x1c8   : > { %2155 = vmatmul.mubr.msk.f32.vlgmr.msra.gmra.mrb[10].mxu0 %vm674_vm5, %v1510_v31 }
 0x1c9   : > { %1699 = vmatmul.mubr.f32.gmra.mrb[2].mxu1 %v1511_v17  ;;  %1787 = vmatprep.mubr.f32.mxu0 %v2556_v1 }
 0x1ca   : > { %1704 = vmatprep.mubr.f32.mxu1 %v1515_v21 }
 0x1cc   : > { %2156 = vmatmul.mubr.msk.f32.gmra.mrb[12].mxu0 %vm674_vm5, %v1513_v53 }
 0x1cd   : > { %v1599_v35 = vpop.permute.xlu0 %1598  ;;  %1705 = vmatmul.mubr.f32.gmra.mrb[4].mxu1 %v1514_v3  ;;  %1793 = vmatprep.mubr.f32.mxu0 %v2556_v1 }
 0x1ce   : > { %1710 = vmatprep.mubr.f32.mxu1 %v1518_v34 }
 0x1d0   : > { %2157 = vmatmul.mubr.msk.f32.gmra.mrb[14].mxu0 %vm674_vm5, %v1516_v36  ;;  %v1604_v38 = vpop.permute.xlu1 %1603 }
 0x1d1   : > { %1711 = vmatmul.mubr.f32.gmra.mrb[6].mxu1 %v1517_v37  ;;  %1799 = vmatprep.mubr.f32.mxu0 %v2556_v1  ;;  %v1609_v40 = vpop.permute.xlu0 %1608 }
 0x1d4   : > { %2158 = vmatmul.mubr.msk.f32.gmra.mrb[16].mxu0 %vm674_vm5, %v1519_v33  ;;  %v1614_v18 = vpop.permute.xlu1 %1613 }
 0x1d5   : > { %1928 = vmatprep.mubr.f32.mxu0 %v2556_v1  ;;  %v659_v58 = vpop.permute.xlu0 %658 }
 0x1d6   : > { %v672_v15 = vmul.f32 %v665_v47, %v659_v58  ;;  %v673_v59 = vmul.f32 %v669_v57, %v659_v58 }
 0x1d8   : > { %v753_v14 = vpop.permute.xlu1 %752 }
 0x1dc   : > { %v744_v61 = vpop.f32.mrb[8].mxu0 }
 0x1dd   : > { %v745_v19 = vadd.f32 %v744_v61, %v672_v15  ;;  %v746_v62 = vpop.f32.mrb[9].mxu0 }
 0x1de   : > { %v747_v54 = vadd.f32 %v746_v62, %v673_v59 }
 0x1df   : > { %v3222_v63 = vadd.f32 %v753_v14, %v745_v19 }
 0x1e0   : > { %v3229_v10 = vadd.f32 %v753_v14, %v747_v54  ;;  %v1855_v54 = vld [vmem:[%s3285_s11] sm:$0x3] }
 0x1e1   : > { %v757_v8 = vmax.f32 %v3222_v63, 0.0 }
 0x1e2   : > { %v758_v24 = vmax.f32 %v3229_v10, 0.0 }
 0x1e3   : > { %1814 = vst [vmem:[%s3227_s25] sm:$0xf] %v757_v8 }
 0x1e4   : > { %1815 = vst [vmem:[%s3227_s25 + $0x8] sm:$0xf] %v758_v24 }
 0x298   : > { %v1694_v0 = vpop.f32.mrb[0].mxu1 }
 0x299   : > { %v1695_v32 = vadd.f32 %v1694_v0, %v1599_v35  ;;  %v1696_v49 = vpop.f32.mrb[1].mxu1  ;;  %v1854_v0 = vld [vmem:[%s3284_s10] sm:$0x3] }
 0x29a   : > { %v1697_v2 = vadd.f32 %v1696_v49, %v1599_v35 }
 0x29b   : > { %v1783_v60 = vpop.f32.mrb[10].mxu0 }
 0x29c   : > { %v1784_v48 = vadd.f32 %v1783_v60, %v1695_v32  ;;  %v1700_v4 = vpop.f32.mrb[2].mxu1  ;;  %v1785_v46 = vpop.f32.mrb[11].mxu0 }
 0x29d   : > { %v1701_v44 = vadd.f32 %v1700_v4, %v1604_v38  ;;  %v1786_v45 = vadd.f32 %v1785_v46, %v1697_v2  ;;  %v1702_v7 = vpop.f32.mrb[3].mxu1  ;;  %v2020_v32 = vpop.permute.xlu0 %2019 }
 0x29e   : > { %v1806_v55 = vmax.f32 %v1784_v48, 0.0  ;;  %v1703_v56 = vadd.f32 %v1702_v7, %v1604_v38 }
 0x29f   : > { %v1807_v6 = vmax.f32 %v1786_v45, 0.0  ;;  %v1789_v9 = vpop.f32.mrb[12].mxu0 }
 0x2a0   : > { %v1824_v42 = vrot.slane %v1806_v55, 4  ;;  %v1790_v11 = vadd.f32 %v1789_v9, %v1701_v44  ;;  %v1706_v50 = vpop.f32.mrb[4].mxu1  ;;  %v1791_v12 = vpop.f32.mrb[13].mxu0 }
 0x2a1   : > { %v1825_v13 = vrot.slane %v1807_v6, 4  ;;  %v1707_v25 = vadd.f32 %v1706_v50, %v1609_v40  ;;  %v1792_v26 = vadd.f32 %v1791_v12, %v1703_v56  ;;  %v1708_v22 = vpop.f32.mrb[5].mxu1 }
 0x2a2   : > { %1846 = vst [vmem:[%s3227_s25] sm:$0xf0] %v1824_v42  ;;  %v1808_v43 = vmax.f32 %v1790_v11, 0.0  ;;  %v1709_v51 = vadd.f32 %v1708_v22, %v1609_v40 }
 0x2a3   : > { %1847 = vst [vmem:[%s3227_s25 + $0x8] sm:$0xf0] %v1825_v13  ;;  %v1809_v39 = vmax.f32 %v1792_v26, 0.0  ;;  %v1795_v16 = vpop.f32.mrb[14].mxu0 }
 0x2a4   : > { %v1826_v20 = vrot.slane %v1808_v43, 4  ;;  %v2260_v5 = vpack.c.bf16 %v1808_v43, %v1806_v55  ;;  %v1796_v23 = vadd.f32 %v1795_v16, %v1707_v25  ;;  %v1712_v27 = vpop.f32.mrb[6].mxu1  ;;  %v1797_v28 = vpop.f32.mrb[15].mxu0 }
 0x2a5   : > { %v1828_v52 = vrot.slane %v1809_v39, 4  ;;  %v2258_v29 = vpack.c.bf16 %v1809_v39, %v1807_v6  ;;  %v1713_v30 = vadd.f32 %v1712_v27, %v1614_v18  ;;  %v1798_v31 = vadd.f32 %v1797_v28, %v1709_v51  ;;  %v1714_v17 = vpop.f32.mrb[7].mxu1 }
 0x2a6   : > { %v1827_v21 = vsel %vm549_vm0, %v1824_v42, %v1826_v20  ;;  %v1810_v53 = vmax.f32 %v1796_v23, 0.0  ;;  %v1715_v3 = vadd.f32 %v1714_v17, %v1614_v18 }
 0x2a7   : > { %1848 = vst [vmem:[%s3227_s25 + $0x10] sm:$0xff] %v1827_v21  ;;  %v1829_v34 = vsel %vm549_vm0, %v1825_v13, %v1828_v52  ;;  %v1811_v35 = vmax.f32 %v1798_v31, 0.0  ;;  %v1801_v36 = vpop.f32.mrb[16].mxu0  ;;  %2259 = vmatprep.subr.bf16.mxu0 %v2258_v29 }
 0x2a8   : > { %1849 = vst [vmem:[%s3227_s25 + $0x18] sm:$0xff] %v1829_v34  ;;  %v1830_v37 = vrot.slane %v1810_v53, 4  ;;  %v1802_v33 = vadd.f32 %v1801_v36, %v1713_v30  ;;  %v1803_v38 = vpop.f32.mrb[17].mxu0  ;;  %2261 = vmatpush1.bf16.msra.mxu0 %v2260_v5 }
 0x2a9   : > { %v1832_v40 = vrot.slane %v1811_v35, 4  ;;  %v1804_v41 = vadd.f32 %v1803_v38, %v1715_v3 }
 0x2aa   : > { %v1831_v47 = vsel %vm549_vm0, %v1826_v20, %v1830_v37  ;;  %v1812_v57 = vmax.f32 %v1802_v33, 0.0 }
 0x2ab   : > { %1850 = vst [vmem:[%s3227_s25 + $0x20] sm:$0xff] %v1831_v47  ;;  %v1833_v18 = vsel %vm549_vm0, %v1828_v52, %v1832_v40  ;;  %v1813_v58 = vmax.f32 %v1804_v41, 0.0 }
 0x2ac   : > { %1851 = vst [vmem:[%s3227_s25 + $0x28] sm:$0xff] %v1833_v18  ;;  %v1834_v15 = vrot.slane %v1812_v57, 4  ;;  %v2265_v59 = vpack.c.bf16 %v1812_v57, %v1810_v53 }
 0x2ad   : > { %v1836_v61 = vrot.slane %v1813_v58, 4  ;;  %v2262_v19 = vpack.c.bf16 %v1813_v58, %v1811_v35 }
 0x2ae   : > { %v1835_v62 = vsel %vm549_vm0, %v1830_v37, %v1834_v15 }
 0x2af   : > { %1852 = vst [vmem:[%s3227_s25 + $0x30] sm:$0xff] %v1835_v62  ;;  %v1837_v14 = vsel %vm549_vm0, %v1832_v40, %v1836_v61  ;;  %2264 = vmatprep.subr.msk.bf16.mxu0 %vm2263_vm12, %v2262_v19 }
 0x2b0   : > { %1853 = vst [vmem:[%s3227_s25 + $0x38] sm:$0xff] %v1837_v14  ;;  %2267 = vmatpush1.bf16.msk.msra.mxu0 %vm2263_vm12, %v2265_v59 }
 0x2b1   : > { %2162 = vmatprep.subr.msk.mxu0 %vm549_vm0, %v758_v24 }
 0x2b3   : > { %2161 = vmatmul.mubr.msk.f32.vlgmr.msra.gmra.mrb[18].mxu0 %vm1856_vm13, %v1855_v54 }
 0x2b4   : > { %2163 = vmatpush1.msk.msra.mxu0 %vm549_vm0, %v757_v8  ;;  %2009 = vmatprep.mubr.f32.mxu0 %v2556_v1 }
 0x2bb   : > { %2164 = vmatmul.mubr.msk.f32.vlgmr.msra.gmra.mrb[18].mxu0 %vm1935_vm14, %v1854_v0 }
 0x38e   : > { %v2011_v49 = vpop.f32.mrb[18].mxu0 }
 0x38f   : > { %v2022_v2 = vadd.f32 %v2020_v32, %v2011_v49  ;;  %v2013_v10 = vpop.f32.mrb[19].mxu0 }
 0x390   : > { %v2023_v60 = vadd.f32 %v2020_v32, %v2013_v10 }
 0x392   : > { %v2026_v63 = vcombine.low %v2022_v2, %v2023_v60 }
 0x394   : > { %2165 = vst.sshfl [vmem:[%s497_s22] sm:$0x33 pattern:$0x76325410] %v2026_v63 }
 0x395 PF: > { %s25_s29 = sadd.s32 1, %s2554_s29  }
 0x396   : > { %p22_p4 = scmp.ge.s32.totalorder %s25_s29, 4  }
 0x398   :  { %24 = sbr.rel (!%p22_p4) target bundleno = 1 (0x1), region = 118 }

</bundles_post_ra>
